<compile_context>
chip_gen: v6e
topology: v6e:2x2x1
jax: 0.10.0
libtpu: 0.0.40
codegen_flags: <defaults>
</compile_context>

<pallas_src>
import jax
import jax.numpy as jnp
from jax.experimental import pallas as pl
from jax.experimental.pallas import tpu as pltpu


KH = KW = 3
STRIDE = 2
COUT = 4
TAPS = KH * KW


# ---------------------------------------------------------------------------
# Pallas kernel: fused im2col (parity-plane slices) + conv (VPU MACs with SMEM
# scalar weights) + tanh-GELU chain, NCHW output written directly.
# ---------------------------------------------------------------------------
def conv_gelu_kernel(planes_ref, w_ref, o_ref):
    # planes_ref: (2, 2, N, Hp//2, Wp//2) f32 VMEM  [row_parity, col_parity, n, h, w]
    # w_ref:      (COUT*TAPS,)            f32 SMEM  flattened OIHW conv weights
    # o_ref:      (N, COUT, Ho, Wo)       f32 VMEM  NCHW output
    Ho = o_ref.shape[2]
    Wo = o_ref.shape[3]

    # Each conv tap (kh, kw) over the stride-2 grid is a contiguous slice of one of the
    # four parity planes: plane (kh%2, kw%2), offset (kh//2, kw//2).
    taps = []
    for kh in range(KH):
        for kw in range(KW):
            rp, cp = kh % 2, kw % 2
            ro, co = kh // 2, kw // 2
            taps.append(planes_ref[rp, cp, :, ro:ro + Ho, co:co + Wo])  # (N, Ho, Wo)

    c0 = 0.7978845608028654            # sqrt(2/pi)
    c1 = 0.044715 * 0.7978845608028654  # folded GELU constant

    for c in range(COUT):
        # Conv channel c: SMEM scalar weight * tap slab (scalar broadcasts free in VPU).
        prods = [w_ref[c * TAPS + t] * taps[t] for t in range(TAPS)]
        # Pairwise (tree) accumulation -> shorter dependent-op chain than a linear MAC chain.
        while len(prods) > 1:
            nxt = [prods[i] + prods[i + 1] for i in range(0, len(prods) - 1, 2)]
            if len(prods) % 2:
                nxt.append(prods[-1])
            prods = nxt
        v2 = prods[0]                                         # conv output, (N, Ho, Wo)

        # tanh-GELU (constants folded; algebraically identical to the PyTorch chain)
        inner = v2 * c0 + (v2 * v2 * v2) * c1
        out_c = (v2 * 0.5) * (jnp.tanh(inner) + 1.0)
        o_ref[:, c, :, :] = out_c.astype(o_ref.dtype)


# ---------------------------------------------------------------------------
# Wrapper: reflection pad + stride-2 parity split, then one pallas_call.
# ---------------------------------------------------------------------------
@jax.jit
def model_forward(x, w):
    """x: (N, 1, H, W) float32, w: (COUT, 1, 3, 3) float32 -> (N, COUT, Ho, Wo)."""
    N = x.shape[0]

    # ReflectionPad2d((left=7, right=7, top=2, bottom=2))
    xp = jnp.pad(x[:, 0], ((0, 0), (2, 2), (7, 7)), mode="reflect").astype(jnp.float32)
    Hp, Wp = xp.shape[1], xp.shape[2]                 # (36, 30)
    Ho = (Hp - KH) // STRIDE + 1                      # 17
    Wo = (Wp - KW) // STRIDE + 1                      # 14

    # Stride-2 parity split: (N, Hp, Wp) -> (2, 2, N, Hp//2, Wp//2).
    # The reshape preserves contiguity (free); the transpose is the only data-moving glue.
    planes = xp.reshape(N, Hp // 2, 2, Wp // 2, 2).transpose(2, 4, 0, 1, 3)

    # Flat (COUT*TAPS,) weights for SMEM scalar reads (c*9 + kh*3 + kw ordering).
    w_flat = w.reshape(-1).astype(jnp.float32)

    m = N * Ho * Wo
    cost = pl.CostEstimate(
        flops=2 * TAPS * COUT * m + 9 * COUT * m,
        transcendentals=COUT * m,
        bytes_accessed=planes.size * 4 + w_flat.size * 4 + COUT * m * 4,
    )

    return pl.pallas_call(
        conv_gelu_kernel,
        out_shape=jax.ShapeDtypeStruct((N, COUT, Ho, Wo), jnp.float32),
        # No grid: whole problem (~25 KiB) lives in VMEM; no pipeline machinery,
        # no double buffers.
        in_specs=[
            pl.BlockSpec(memory_space=pltpu.MemorySpace.VMEM),
            pl.BlockSpec(memory_space=pltpu.MemorySpace.SMEM),
        ],
        out_specs=pl.BlockSpec(memory_space=pltpu.MemorySpace.VMEM),
        cost_estimate=cost,
    )(planes, w_flat)


# ---------------------------------------------------------------------------
# Pure-JAX reference (for a correctness check)
# ---------------------------------------------------------------------------
def reference_forward(x, w):
    xp = jnp.pad(x, ((0, 0), (0, 0), (2, 2), (7, 7)), mode="reflect")
    v2 = jax.lax.conv_general_dilated(
        xp, w, window_strides=(2, 2), padding="VALID",
        dimension_numbers=("NCHW", "OIHW", "NCHW"))
    v3 = v2 * 0.5
    v6 = v2 + (v2 * v2 * v2) * 0.044715
    v8 = jnp.tanh(v6 * 0.7978845608028654)
    return v3 * (v8 + 1.0)


if __name__ == "__main__":
    key = jax.random.PRNGKey(0)
    kx, kw = jax.random.split(key)

    # Input matching the PyTorch script: torch.randn(2, 1, 32, 16)
    x = jax.random.normal(kx, (2, 1, 32, 16), dtype=jnp.float32)
    # Deterministic Conv2d(1, 4, 3, bias=False) weight, shape (Cout, Cin, kH, kW)
    w = jax.random.normal(kw, (4, 1, 3, 3), dtype=jnp.float32) * 0.1

    out = model_forward(x, w)
    jax.block_until_ready(out)

    ref = reference_forward(x, w)
    assert out.shape == (2, 4, 17, 14), out.shape
    assert jnp.allclose(out, ref, atol=1e-5, rtol=1e-5), "mismatch vs reference"

    print("KERNEL_OK")
</pallas_src>

<mosaic_0001>
module attributes {stable_mosaic.version = 11 : i64} {
  func.func @conv_gelu_kernel(%arg0: memref<2x2x2x18x15xf32, #tpu.memory_space<vmem>>, %arg1: memref<36xf32, #tpu.memory_space<smem>>, %arg2: memref<2x4x17x14xf32, #tpu.memory_space<vmem>>) attributes {dimension_semantics = [], scalar_prefetch = 0 : i64, scratch_operands = 0 : i64, tpu.core_type = #tpu.core_type<tc>} {
    %c0 = arith.constant 0 : index
    %c0_0 = arith.constant 0 : index
    %c0_1 = arith.constant 0 : index
    %c0_2 = arith.constant 0 : index
    %c0_3 = arith.constant 0 : index
    %0 = vector.load %arg0[%c0, %c0_0, %c0_1, %c0_2, %c0_3] : memref<2x2x2x18x15xf32, #tpu.memory_space<vmem>>, vector<1x1x2x17x14xf32>
    %1 = vector.shape_cast %0 : vector<1x1x2x17x14xf32> to vector<2x17x14xf32>
    %c0_4 = arith.constant 0 : index
    %c1 = arith.constant 1 : index
    %c0_5 = arith.constant 0 : index
    %c0_6 = arith.constant 0 : index
    %c0_7 = arith.constant 0 : index
    %2 = vector.load %arg0[%c0_4, %c1, %c0_5, %c0_6, %c0_7] : memref<2x2x2x18x15xf32, #tpu.memory_space<vmem>>, vector<1x1x2x17x14xf32>
    %3 = vector.shape_cast %2 : vector<1x1x2x17x14xf32> to vector<2x17x14xf32>
    %c0_8 = arith.constant 0 : index
    %c0_9 = arith.constant 0 : index
    %c0_10 = arith.constant 0 : index
    %c0_11 = arith.constant 0 : index
    %c1_12 = arith.constant 1 : index
    %4 = vector.load %arg0[%c0_8, %c0_9, %c0_10, %c0_11, %c1_12] : memref<2x2x2x18x15xf32, #tpu.memory_space<vmem>>, vector<1x1x2x17x14xf32>
    %5 = vector.shape_cast %4 : vector<1x1x2x17x14xf32> to vector<2x17x14xf32>
    %c1_13 = arith.constant 1 : index
    %c0_14 = arith.constant 0 : index
    %c0_15 = arith.constant 0 : index
    %c0_16 = arith.constant 0 : index
    %c0_17 = arith.constant 0 : index
    %6 = vector.load %arg0[%c1_13, %c0_14, %c0_15, %c0_16, %c0_17] : memref<2x2x2x18x15xf32, #tpu.memory_space<vmem>>, vector<1x1x2x17x14xf32>
    %7 = vector.shape_cast %6 : vector<1x1x2x17x14xf32> to vector<2x17x14xf32>
    %c1_18 = arith.constant 1 : index
    %c1_19 = arith.constant 1 : index
    %c0_20 = arith.constant 0 : index
    %c0_21 = arith.constant 0 : index
    %c0_22 = arith.constant 0 : index
    %8 = vector.load %arg0[%c1_18, %c1_19, %c0_20, %c0_21, %c0_22] : memref<2x2x2x18x15xf32, #tpu.memory_space<vmem>>, vector<1x1x2x17x14xf32>
    %9 = vector.shape_cast %8 : vector<1x1x2x17x14xf32> to vector<2x17x14xf32>
    %c1_23 = arith.constant 1 : index
    %c0_24 = arith.constant 0 : index
    %c0_25 = arith.constant 0 : index
    %c0_26 = arith.constant 0 : index
    %c1_27 = arith.constant 1 : index
    %10 = vector.load %arg0[%c1_23, %c0_24, %c0_25, %c0_26, %c1_27] : memref<2x2x2x18x15xf32, #tpu.memory_space<vmem>>, vector<1x1x2x17x14xf32>
    %11 = vector.shape_cast %10 : vector<1x1x2x17x14xf32> to vector<2x17x14xf32>
    %c0_28 = arith.constant 0 : index
    %c0_29 = arith.constant 0 : index
    %c0_30 = arith.constant 0 : index
    %c1_31 = arith.constant 1 : index
    %c0_32 = arith.constant 0 : index
    %12 = vector.load %arg0[%c0_28, %c0_29, %c0_30, %c1_31, %c0_32] : memref<2x2x2x18x15xf32, #tpu.memory_space<vmem>>, vector<1x1x2x17x14xf32>
    %13 = vector.shape_cast %12 : vector<1x1x2x17x14xf32> to vector<2x17x14xf32>
    %c0_33 = arith.constant 0 : index
    %c1_34 = arith.constant 1 : index
    %c0_35 = arith.constant 0 : index
    %c1_36 = arith.constant 1 : index
    %c0_37 = arith.constant 0 : index
    %14 = vector.load %arg0[%c0_33, %c1_34, %c0_35, %c1_36, %c0_37] : memref<2x2x2x18x15xf32, #tpu.memory_space<vmem>>, vector<1x1x2x17x14xf32>
    %15 = vector.shape_cast %14 : vector<1x1x2x17x14xf32> to vector<2x17x14xf32>
    %c0_38 = arith.constant 0 : index
    %c0_39 = arith.constant 0 : index
    %c0_40 = arith.constant 0 : index
    %c1_41 = arith.constant 1 : index
    %c1_42 = arith.constant 1 : index
    %16 = vector.load %arg0[%c0_38, %c0_39, %c0_40, %c1_41, %c1_42] : memref<2x2x2x18x15xf32, #tpu.memory_space<vmem>>, vector<1x1x2x17x14xf32>
    %17 = vector.shape_cast %16 : vector<1x1x2x17x14xf32> to vector<2x17x14xf32>
    %c0_43 = arith.constant 0 : index
    %18 = memref.load %arg1[%c0_43] : memref<36xf32, #tpu.memory_space<smem>>
    %19 = vector.broadcast %18 : f32 to vector<2x17x14xf32>
    %20 = arith.mulf %19, %1 : vector<2x17x14xf32>
    %c1_44 = arith.constant 1 : index
    %21 = memref.load %arg1[%c1_44] : memref<36xf32, #tpu.memory_space<smem>>
    %22 = vector.broadcast %21 : f32 to vector<2x17x14xf32>
    %23 = arith.mulf %22, %3 : vector<2x17x14xf32>
    %c2 = arith.constant 2 : index
    %24 = memref.load %arg1[%c2] : memref<36xf32, #tpu.memory_space<smem>>
    %25 = vector.broadcast %24 : f32 to vector<2x17x14xf32>
    %26 = arith.mulf %25, %5 : vector<2x17x14xf32>
    %c3 = arith.constant 3 : index
    %27 = memref.load %arg1[%c3] : memref<36xf32, #tpu.memory_space<smem>>
    %28 = vector.broadcast %27 : f32 to vector<2x17x14xf32>
    %29 = arith.mulf %28, %7 : vector<2x17x14xf32>
    %c4 = arith.constant 4 : index
    %30 = memref.load %arg1[%c4] : memref<36xf32, #tpu.memory_space<smem>>
    %31 = vector.broadcast %30 : f32 to vector<2x17x14xf32>
    %32 = arith.mulf %31, %9 : vector<2x17x14xf32>
    %c5 = arith.constant 5 : index
    %33 = memref.load %arg1[%c5] : memref<36xf32, #tpu.memory_space<smem>>
    %34 = vector.broadcast %33 : f32 to vector<2x17x14xf32>
    %35 = arith.mulf %34, %11 : vector<2x17x14xf32>
    %c6 = arith.constant 6 : index
    %36 = memref.load %arg1[%c6] : memref<36xf32, #tpu.memory_space<smem>>
    %37 = vector.broadcast %36 : f32 to vector<2x17x14xf32>
    %38 = arith.mulf %37, %13 : vector<2x17x14xf32>
    %c7 = arith.constant 7 : index
    %39 = memref.load %arg1[%c7] : memref<36xf32, #tpu.memory_space<smem>>
    %40 = vector.broadcast %39 : f32 to vector<2x17x14xf32>
    %41 = arith.mulf %40, %15 : vector<2x17x14xf32>
    %c8 = arith.constant 8 : index
    %42 = memref.load %arg1[%c8] : memref<36xf32, #tpu.memory_space<smem>>
    %43 = vector.broadcast %42 : f32 to vector<2x17x14xf32>
    %44 = arith.mulf %43, %17 : vector<2x17x14xf32>
    %45 = arith.addf %20, %23 : vector<2x17x14xf32>
    %46 = arith.addf %26, %29 : vector<2x17x14xf32>
    %47 = arith.addf %32, %35 : vector<2x17x14xf32>
    %48 = arith.addf %38, %41 : vector<2x17x14xf32>
    %49 = arith.addf %45, %46 : vector<2x17x14xf32>
    %50 = arith.addf %47, %48 : vector<2x17x14xf32>
    %51 = arith.addf %49, %50 : vector<2x17x14xf32>
    %52 = arith.addf %51, %44 : vector<2x17x14xf32>
    %cst = arith.constant 0.797884583 : f32
    %53 = vector.broadcast %cst : f32 to vector<2x17x14xf32>
    %54 = arith.mulf %52, %53 : vector<2x17x14xf32>
    %55 = arith.mulf %52, %52 : vector<2x17x14xf32>
    %56 = arith.mulf %55, %52 : vector<2x17x14xf32>
    %cst_45 = arith.constant 0.0356774069 : f32
    %57 = vector.broadcast %cst_45 : f32 to vector<2x17x14xf32>
    %58 = arith.mulf %56, %57 : vector<2x17x14xf32>
    %59 = arith.addf %54, %58 : vector<2x17x14xf32>
    %cst_46 = arith.constant 5.000000e-01 : f32
    %60 = vector.broadcast %cst_46 : f32 to vector<2x17x14xf32>
    %61 = arith.mulf %52, %60 : vector<2x17x14xf32>
    %62 = math.tanh %59 : vector<2x17x14xf32>
    %cst_47 = arith.constant 1.000000e+00 : f32
    %63 = vector.broadcast %cst_47 : f32 to vector<2x17x14xf32>
    %64 = arith.addf %62, %63 : vector<2x17x14xf32>
    %65 = arith.mulf %61, %64 : vector<2x17x14xf32>
    %c0_48 = arith.constant 0 : index
    %c0_49 = arith.constant 0 : index
    %c0_50 = arith.constant 0 : index
    %c0_51 = arith.constant 0 : index
    %66 = vector.load %arg2[%c0_48, %c0_49, %c0_50, %c0_51] : memref<2x4x17x14xf32, #tpu.memory_space<vmem>>, vector<2x1x17x14xf32>
    %67 = vector.shape_cast %66 : vector<2x1x17x14xf32> to vector<2x17x14xf32>
    %68 = vector.shape_cast %65 : vector<2x17x14xf32> to vector<2x1x17x14xf32>
    tpu.vector_store %arg2[%c0_48, %c0_49, %c0_50, %c0_51], %68 {strides = array<i32>} : memref<2x4x17x14xf32, #tpu.memory_space<vmem>>, vector<2x1x17x14xf32>,
    %c9 = arith.constant 9 : index
    %69 = memref.load %arg1[%c9] : memref<36xf32, #tpu.memory_space<smem>>
    %70 = vector.broadcast %69 : f32 to vector<2x17x14xf32>
    %71 = arith.mulf %70, %1 : vector<2x17x14xf32>
    %c10 = arith.constant 10 : index
    %72 = memref.load %arg1[%c10] : memref<36xf32, #tpu.memory_space<smem>>
    %73 = vector.broadcast %72 : f32 to vector<2x17x14xf32>
    %74 = arith.mulf %73, %3 : vector<2x17x14xf32>
    %c11 = arith.constant 11 : index
    %75 = memref.load %arg1[%c11] : memref<36xf32, #tpu.memory_space<smem>>
    %76 = vector.broadcast %75 : f32 to vector<2x17x14xf32>
    %77 = arith.mulf %76, %5 : vector<2x17x14xf32>
    %c12 = arith.constant 12 : index
    %78 = memref.load %arg1[%c12] : memref<36xf32, #tpu.memory_space<smem>>
    %79 = vector.broadcast %78 : f32 to vector<2x17x14xf32>
    %80 = arith.mulf %79, %7 : vector<2x17x14xf32>
    %c13 = arith.constant 13 : index
    %81 = memref.load %arg1[%c13] : memref<36xf32, #tpu.memory_space<smem>>
    %82 = vector.broadcast %81 : f32 to vector<2x17x14xf32>
    %83 = arith.mulf %82, %9 : vector<2x17x14xf32>
    %c14 = arith.constant 14 : index
    %84 = memref.load %arg1[%c14] : memref<36xf32, #tpu.memory_space<smem>>
    %85 = vector.broadcast %84 : f32 to vector<2x17x14xf32>
    %86 = arith.mulf %85, %11 : vector<2x17x14xf32>
    %c15 = arith.constant 15 : index
    %87 = memref.load %arg1[%c15] : memref<36xf32, #tpu.memory_space<smem>>
    %88 = vector.broadcast %87 : f32 to vector<2x17x14xf32>
    %89 = arith.mulf %88, %13 : vector<2x17x14xf32>
    %c16 = arith.constant 16 : index
    %90 = memref.load %arg1[%c16] : memref<36xf32, #tpu.memory_space<smem>>
    %91 = vector.broadcast %90 : f32 to vector<2x17x14xf32>
    %92 = arith.mulf %91, %15 : vector<2x17x14xf32>
    %c17 = arith.constant 17 : index
    %93 = memref.load %arg1[%c17] : memref<36xf32, #tpu.memory_space<smem>>
    %94 = vector.broadcast %93 : f32 to vector<2x17x14xf32>
    %95 = arith.mulf %94, %17 : vector<2x17x14xf32>
    %96 = arith.addf %71, %74 : vector<2x17x14xf32>
    %97 = arith.addf %77, %80 : vector<2x17x14xf32>
    %98 = arith.addf %83, %86 : vector<2x17x14xf32>
    %99 = arith.addf %89, %92 : vector<2x17x14xf32>
    %100 = arith.addf %96, %97 : vector<2x17x14xf32>
    %101 = arith.addf %98, %99 : vector<2x17x14xf32>
    %102 = arith.addf %100, %101 : vector<2x17x14xf32>
    %103 = arith.addf %102, %95 : vector<2x17x14xf32>
    %cst_52 = arith.constant 0.797884583 : f32
    %104 = vector.broadcast %cst_52 : f32 to vector<2x17x14xf32>
    %105 = arith.mulf %103, %104 : vector<2x17x14xf32>
    %106 = arith.mulf %103, %103 : vector<2x17x14xf32>
    %107 = arith.mulf %106, %103 : vector<2x17x14xf32>
    %cst_53 = arith.constant 0.0356774069 : f32
    %108 = vector.broadcast %cst_53 : f32 to vector<2x17x14xf32>
    %109 = arith.mulf %107, %108 : vector<2x17x14xf32>
    %110 = arith.addf %105, %109 : vector<2x17x14xf32>
    %cst_54 = arith.constant 5.000000e-01 : f32
    %111 = vector.broadcast %cst_54 : f32 to vector<2x17x14xf32>
    %112 = arith.mulf %103, %111 : vector<2x17x14xf32>
    %113 = math.tanh %110 : vector<2x17x14xf32>
    %cst_55 = arith.constant 1.000000e+00 : f32
    %114 = vector.broadcast %cst_55 : f32 to vector<2x17x14xf32>
    %115 = arith.addf %113, %114 : vector<2x17x14xf32>
    %116 = arith.mulf %112, %115 : vector<2x17x14xf32>
    %c0_56 = arith.constant 0 : index
    %c1_57 = arith.constant 1 : index
    %c0_58 = arith.constant 0 : index
    %c0_59 = arith.constant 0 : index
    %117 = vector.load %arg2[%c0_56, %c1_57, %c0_58, %c0_59] : memref<2x4x17x14xf32, #tpu.memory_space<vmem>>, vector<2x1x17x14xf32>
    %118 = vector.shape_cast %117 : vector<2x1x17x14xf32> to vector<2x17x14xf32>
    %119 = vector.shape_cast %116 : vector<2x17x14xf32> to vector<2x1x17x14xf32>
    tpu.vector_store %arg2[%c0_56, %c1_57, %c0_58, %c0_59], %119 {strides = array<i32>} : memref<2x4x17x14xf32, #tpu.memory_space<vmem>>, vector<2x1x17x14xf32>,
    %c18 = arith.constant 18 : index
    %120 = memref.load %arg1[%c18] : memref<36xf32, #tpu.memory_space<smem>>
    %121 = vector.broadcast %120 : f32 to vector<2x17x14xf32>
    %122 = arith.mulf %121, %1 : vector<2x17x14xf32>
    %c19 = arith.constant 19 : index
    %123 = memref.load %arg1[%c19] : memref<36xf32, #tpu.memory_space<smem>>
    %124 = vector.broadcast %123 : f32 to vector<2x17x14xf32>
    %125 = arith.mulf %124, %3 : vector<2x17x14xf32>
    %c20 = arith.constant 20 : index
    %126 = memref.load %arg1[%c20] : memref<36xf32, #tpu.memory_space<smem>>
    %127 = vector.broadcast %126 : f32 to vector<2x17x14xf32>
    %128 = arith.mulf %127, %5 : vector<2x17x14xf32>
    %c21 = arith.constant 21 : index
    %129 = memref.load %arg1[%c21] : memref<36xf32, #tpu.memory_space<smem>>
    %130 = vector.broadcast %129 : f32 to vector<2x17x14xf32>
    %131 = arith.mulf %130, %7 : vector<2x17x14xf32>
    %c22 = arith.constant 22 : index
    %132 = memref.load %arg1[%c22] : memref<36xf32, #tpu.memory_space<smem>>
    %133 = vector.broadcast %132 : f32 to vector<2x17x14xf32>
    %134 = arith.mulf %133, %9 : vector<2x17x14xf32>
    %c23 = arith.constant 23 : index
    %135 = memref.load %arg1[%c23] : memref<36xf32, #tpu.memory_space<smem>>
    %136 = vector.broadcast %135 : f32 to vector<2x17x14xf32>
    %137 = arith.mulf %136, %11 : vector<2x17x14xf32>
    %c24 = arith.constant 24 : index
    %138 = memref.load %arg1[%c24] : memref<36xf32, #tpu.memory_space<smem>>
    %139 = vector.broadcast %138 : f32 to vector<2x17x14xf32>
    %140 = arith.mulf %139, %13 : vector<2x17x14xf32>
    %c25 = arith.constant 25 : index
    %141 = memref.load %arg1[%c25] : memref<36xf32, #tpu.memory_space<smem>>
    %142 = vector.broadcast %141 : f32 to vector<2x17x14xf32>
    %143 = arith.mulf %142, %15 : vector<2x17x14xf32>
    %c26 = arith.constant 26 : index
    %144 = memref.load %arg1[%c26] : memref<36xf32, #tpu.memory_space<smem>>
    %145 = vector.broadcast %144 : f32 to vector<2x17x14xf32>
    %146 = arith.mulf %145, %17 : vector<2x17x14xf32>
    %147 = arith.addf %122, %125 : vector<2x17x14xf32>
    %148 = arith.addf %128, %131 : vector<2x17x14xf32>
    %149 = arith.addf %134, %137 : vector<2x17x14xf32>
    %150 = arith.addf %140, %143 : vector<2x17x14xf32>
    %151 = arith.addf %147, %148 : vector<2x17x14xf32>
    %152 = arith.addf %149, %150 : vector<2x17x14xf32>
    %153 = arith.addf %151, %152 : vector<2x17x14xf32>
    %154 = arith.addf %153, %146 : vector<2x17x14xf32>
    %cst_60 = arith.constant 0.797884583 : f32
    %155 = vector.broadcast %cst_60 : f32 to vector<2x17x14xf32>
    %156 = arith.mulf %154, %155 : vector<2x17x14xf32>
    %157 = arith.mulf %154, %154 : vector<2x17x14xf32>
    %158 = arith.mulf %157, %154 : vector<2x17x14xf32>
    %cst_61 = arith.constant 0.0356774069 : f32
    %159 = vector.broadcast %cst_61 : f32 to vector<2x17x14xf32>
    %160 = arith.mulf %158, %159 : vector<2x17x14xf32>
    %161 = arith.addf %156, %160 : vector<2x17x14xf32>
    %cst_62 = arith.constant 5.000000e-01 : f32
    %162 = vector.broadcast %cst_62 : f32 to vector<2x17x14xf32>
    %163 = arith.mulf %154, %162 : vector<2x17x14xf32>
    %164 = math.tanh %161 : vector<2x17x14xf32>
    %cst_63 = arith.constant 1.000000e+00 : f32
    %165 = vector.broadcast %cst_63 : f32 to vector<2x17x14xf32>
    %166 = arith.addf %164, %165 : vector<2x17x14xf32>
    %167 = arith.mulf %163, %166 : vector<2x17x14xf32>
    %c0_64 = arith.constant 0 : index
    %c2_65 = arith.constant 2 : index
    %c0_66 = arith.constant 0 : index
    %c0_67 = arith.constant 0 : index
    %168 = vector.load %arg2[%c0_64, %c2_65, %c0_66, %c0_67] : memref<2x4x17x14xf32, #tpu.memory_space<vmem>>, vector<2x1x17x14xf32>
    %169 = vector.shape_cast %168 : vector<2x1x17x14xf32> to vector<2x17x14xf32>
    %170 = vector.shape_cast %167 : vector<2x17x14xf32> to vector<2x1x17x14xf32>
    tpu.vector_store %arg2[%c0_64, %c2_65, %c0_66, %c0_67], %170 {strides = array<i32>} : memref<2x4x17x14xf32, #tpu.memory_space<vmem>>, vector<2x1x17x14xf32>,
    %c27 = arith.constant 27 : index
    %171 = memref.load %arg1[%c27] : memref<36xf32, #tpu.memory_space<smem>>
    %172 = vector.broadcast %171 : f32 to vector<2x17x14xf32>
    %173 = arith.mulf %172, %1 : vector<2x17x14xf32>
    %c28 = arith.constant 28 : index
    %174 = memref.load %arg1[%c28] : memref<36xf32, #tpu.memory_space<smem>>
    %175 = vector.broadcast %174 : f32 to vector<2x17x14xf32>
    %176 = arith.mulf %175, %3 : vector<2x17x14xf32>
    %c29 = arith.constant 29 : index
    %177 = memref.load %arg1[%c29] : memref<36xf32, #tpu.memory_space<smem>>
    %178 = vector.broadcast %177 : f32 to vector<2x17x14xf32>
    %179 = arith.mulf %178, %5 : vector<2x17x14xf32>
    %c30 = arith.constant 30 : index
    %180 = memref.load %arg1[%c30] : memref<36xf32, #tpu.memory_space<smem>>
    %181 = vector.broadcast %180 : f32 to vector<2x17x14xf32>
    %182 = arith.mulf %181, %7 : vector<2x17x14xf32>
    %c31 = arith.constant 31 : index
    %183 = memref.load %arg1[%c31] : memref<36xf32, #tpu.memory_space<smem>>
    %184 = vector.broadcast %183 : f32 to vector<2x17x14xf32>
    %185 = arith.mulf %184, %9 : vector<2x17x14xf32>
    %c32 = arith.constant 32 : index
    %186 = memref.load %arg1[%c32] : memref<36xf32, #tpu.memory_space<smem>>
    %187 = vector.broadcast %186 : f32 to vector<2x17x14xf32>
    %188 = arith.mulf %187, %11 : vector<2x17x14xf32>
    %c33 = arith.constant 33 : index
    %189 = memref.load %arg1[%c33] : memref<36xf32, #tpu.memory_space<smem>>
    %190 = vector.broadcast %189 : f32 to vector<2x17x14xf32>
    %191 = arith.mulf %190, %13 : vector<2x17x14xf32>
    %c34 = arith.constant 34 : index
    %192 = memref.load %arg1[%c34] : memref<36xf32, #tpu.memory_space<smem>>
    %193 = vector.broadcast %192 : f32 to vector<2x17x14xf32>
    %194 = arith.mulf %193, %15 : vector<2x17x14xf32>
    %c35 = arith.constant 35 : index
    %195 = memref.load %arg1[%c35] : memref<36xf32, #tpu.memory_space<smem>>
    %196 = vector.broadcast %195 : f32 to vector<2x17x14xf32>
    %197 = arith.mulf %196, %17 : vector<2x17x14xf32>
    %198 = arith.addf %173, %176 : vector<2x17x14xf32>
    %199 = arith.addf %179, %182 : vector<2x17x14xf32>
    %200 = arith.addf %185, %188 : vector<2x17x14xf32>
    %201 = arith.addf %191, %194 : vector<2x17x14xf32>
    %202 = arith.addf %198, %199 : vector<2x17x14xf32>
    %203 = arith.addf %200, %201 : vector<2x17x14xf32>
    %204 = arith.addf %202, %203 : vector<2x17x14xf32>
    %205 = arith.addf %204, %197 : vector<2x17x14xf32>
    %cst_68 = arith.constant 0.797884583 : f32
    %206 = vector.broadcast %cst_68 : f32 to vector<2x17x14xf32>
    %207 = arith.mulf %205, %206 : vector<2x17x14xf32>
    %208 = arith.mulf %205, %205 : vector<2x17x14xf32>
    %209 = arith.mulf %208, %205 : vector<2x17x14xf32>
    %cst_69 = arith.constant 0.0356774069 : f32
    %210 = vector.broadcast %cst_69 : f32 to vector<2x17x14xf32>
    %211 = arith.mulf %209, %210 : vector<2x17x14xf32>
    %212 = arith.addf %207, %211 : vector<2x17x14xf32>
    %cst_70 = arith.constant 5.000000e-01 : f32
    %213 = vector.broadcast %cst_70 : f32 to vector<2x17x14xf32>
    %214 = arith.mulf %205, %213 : vector<2x17x14xf32>
    %215 = math.tanh %212 : vector<2x17x14xf32>
    %cst_71 = arith.constant 1.000000e+00 : f32
    %216 = vector.broadcast %cst_71 : f32 to vector<2x17x14xf32>
    %217 = arith.addf %215, %216 : vector<2x17x14xf32>
    %218 = arith.mulf %214, %217 : vector<2x17x14xf32>
    %c0_72 = arith.constant 0 : index
    %c3_73 = arith.constant 3 : index
    %c0_74 = arith.constant 0 : index
    %c0_75 = arith.constant 0 : index
    %219 = vector.load %arg2[%c0_72, %c3_73, %c0_74, %c0_75] : memref<2x4x17x14xf32, #tpu.memory_space<vmem>>, vector<2x1x17x14xf32>
    %220 = vector.shape_cast %219 : vector<2x1x17x14xf32> to vector<2x17x14xf32>
    %221 = vector.shape_cast %218 : vector<2x17x14xf32> to vector<2x1x17x14xf32>
    tpu.vector_store %arg2[%c0_72, %c3_73, %c0_74, %c0_75], %221 {strides = array<i32>} : memref<2x4x17x14xf32, #tpu.memory_space<vmem>>, vector<2x1x17x14xf32>,
    return
  }
}

</mosaic_0001>

<bundles_post_ra>
// kernel: model_forward.1
= control target key start
LH: loop header
LB: loop body
LE: loop exit
PB: predicated region body
PF: predicated region fallthrough
CT: control target
= control target key end

     0   :  { %7 = vsyncpa [#allocation3], 0  ;;  %s2539_s0 = inlined_call_operand.vmem [shape: f32[2,2,2,18,15], index: 0, kind: input, shape index: {}]   ;;  %s2540_s1 = inlined_call_operand.vmem [shape: f32[36], index: 1, kind: input, shape index: {}]   ;;  %s2541_s2 = inlined_call_operand.vmem [shape: f32[2,4,17,14], index: 2, kind: output, shape index: {}]  }
   0x1   :  { %s16_s11 = sshll.u32 %s2540_s1, 4  ;;  %s17_s11 = int_to_ptr.vmem [resolvable:$true] %s16_s11 }
   0x2   :  { %s1309_s12 = scalar_lea.vmem %s17_s11, 16  ;;  %p1314_p1 = scmp.lt.s32.totalorder %s17_s11, %s17_s11 }
   0x3   :  { %p1310_p0 = scmp.ne.s32.totalorder %s17_s11, %s1309_s12  ;;  %p1315_p2 = scmp.lt.s32.totalorder %s1309_s12, %s1309_s12 }
   0x5   :  { %p1316_p3 = por %p1315_p2, %p1314_p1 }
   0x7   :  { %p1317_p4 = pnand %p1316_p3, %p1310_p0 }
   0x9   :  { %1320 = shalt.err (!%p1317_p4)
}
   0xa   :  { %s1323_s13 = smov [#allocation2]  }
   0xb   :  { %19 = dma.vmem_to_smem %s17_s11, 16, %s1323_s13, [#allocation3]  }
   0xc   :  { %1321 = dma.done.wait [#allocation3], 16  }
   0xd   :  { %1322 = vsyncadd [#allocation3], 4294967280 }
   0xe   :  { %23 = sfence }
   0xf   :  { %s1203_s14 = sld [smem:[#allocation2 + $0x3]]  ;;  %v1347_v0 = vld [vmem:[%s2539_s0 + $0x70] sm:$0x1]  ;;  %v1352_v1 = vld [vmem:[%s2539_s0 + $0x60] sm:$0xff]  ;;  %v1357_v3 = vld [vmem:[%s2539_s0 + $0x78] sm:$0xff]  ;;  %s1324_s23 = smov 1  }
  0x10   :  { %v1362_v4 = vld [vmem:[%s2539_s0 + $0x68] sm:$0xff]  ;;  %s1205_s22 = sld [smem:[#allocation2 + $0x5]]  ;;  %v1378_v10 = vld [vmem:[%s2539_s0 + $0x80] sm:$0xff]  ;;  %s1325_s29 = smov 127   ;;  %v1413_v26 = vld [vmem:[%s2539_s0 + $0x11] sm:$0x1] }
  0x11   :  { %v1373_v9 = vld [vmem:[%s2539_s0 + $0x88] sm:$0x1]  ;;  %s1208_s28 = sld [smem:[#allocation2 + $0x8]]  ;;  %v1399_v20 = vld [vmem:[%s2539_s0 + $0x9] sm:$0xff]  ;;  %v1454_v47 = vld [vmem:[%s2539_s0 + $0x19] sm:$0xff]  ;;  %vm333_vm0 = vcmask 113664  }
  0x12   :  { %s1212_s30 = sld [smem:[#allocation2 + $0xc]]  ;;  %v1404_v22 = vld [vmem:[%s2539_s0 + $0x1] sm:$0xff]  ;;  %v1468_v51 = vld [vmem:[%s2539_s0 + $0x29] sm:$0x1]  ;;  %vm336_vm1 = vcmask 106496  }
  0x13   :  { %s1227_s9 = sld [smem:[#allocation2 + $0x15]]  ;;  %v1463_v50 = vld [vmem:[%s2539_s0 + $0x21] sm:$0xff] }
  0x14   :  { %s1242_s10 = sld [smem:[#allocation2 + $0x1e]]  ;;  %2557 = vst [vmem:[#allocation5_spill] sm:$0xff] %v1463_v50 }
  0x15   :  { %v88_v2 = vstv %s1203_s14  ;;  %s1214_s13 = sld [smem:[#allocation2 + $0xe]] }
  0x16   :  { %v91_v5 = vmul.f32 %v1347_v0, %v88_v2  ;;  %v89_v6 = vmul.f32 %v1352_v1, %v88_v2  ;;  %v92_v7 = vmul.f32 %v1357_v3, %v88_v2  ;;  %v90_v8 = vmul.f32 %v1362_v4, %v88_v2  ;;  %s1229_s17 = sld [smem:[#allocation2 + $0x17]] }
  0x17   :  { %v94_v11 = vmul.f32 %v1373_v9, %v88_v2  ;;  %v93_v12 = vmul.f32 %v1378_v10, %v88_v2  ;;  %v104_v13 = vstv %s1205_s22  ;;  %v128_v21 = vstv %s1208_s28  ;;  %s1244_s18 = sld [smem:[#allocation2 + $0x20]] }
  0x18   :  { %151 = vrot.lane.b32.xlu1 %v91_v5, %s1324_s23  ;;  %147 = vrot.lane.b32.xlu0 %v89_v6, %s1324_s23  ;;  %v106_v14 = vmul.f32 %v1362_v4, %v104_v13  ;;  %v105_v15 = vmul.f32 %v1352_v1, %v104_v13  ;;  %v108_v16 = vmul.f32 %v1357_v3, %v104_v13  ;;  %v366_v25 = vstv %s1212_s30  ;;  %s1202_s19 = sld [smem:[#allocation2 + $0x2]] }
  0x19   :  { %v107_v17 = vmul.f32 %v1347_v0, %v104_v13  ;;  %v110_v18 = vmul.f32 %v1373_v9, %v104_v13  ;;  %v109_v19 = vmul.f32 %v1378_v10, %v104_v13  ;;  %v130_v23 = vmul.f32 %v128_v21, %v1399_v20  ;;  %s1211_s5 = sld [smem:[#allocation2 + $0xb]] }
  0x1a   :  { %v129_v24 = vmul.f32 %v128_v21, %v1404_v22  ;;  %v367_v27 = vmul.f32 %v1352_v1, %v366_v25  ;;  %v131_v28 = vmul.f32 %v128_v21, %v1413_v26  ;;  %v369_v29 = vmul.f32 %v1347_v0, %v366_v25  ;;  %s1226_s6 = sld [smem:[#allocation2 + $0x14]] }
  0x1b   :  { %v368_v30 = vmul.f32 %v1362_v4, %v366_v25  ;;  %v371_v31 = vmul.f32 %v1378_v10, %v366_v25  ;;  %v370_v32 = vmul.f32 %v1357_v3, %v366_v25  ;;  %v643_v33 = vstv %s1227_s9  ;;  %s1241_s7 = sld [smem:[#allocation2 + $0x1d]] }
  0x1c   :  { %153 = vrot.lane.b32.xlu1 %v92_v7, %s1324_s23  ;;  %149 = vrot.lane.b32.xlu0 %v90_v8, %s1324_s23  ;;  %v644_v34 = vmul.f32 %v1352_v1, %v643_v33  ;;  %v372_v35 = vmul.f32 %v1373_v9, %v366_v25  ;;  %v646_v36 = vmul.f32 %v1347_v0, %v643_v33  ;;  %v920_v40 = vstv %s1242_s10  ;;  %s1217_s8 = sld [smem:[#allocation2 + $0x11]] }
  0x1d   :  { %v645_v37 = vmul.f32 %v1362_v4, %v643_v33  ;;  %v648_v38 = vmul.f32 %v1378_v10, %v643_v33  ;;  %v647_v39 = vmul.f32 %v1357_v3, %v643_v33  ;;  %v921_v41 = vmul.f32 %v1352_v1, %v920_v40  ;;  %s1232_s9 = sld [smem:[#allocation2 + $0x1a]] }
  0x1e   :  { %v649_v42 = vmul.f32 %v1373_v9, %v643_v33  ;;  %v923_v43 = vmul.f32 %v1347_v0, %v920_v40  ;;  %v922_v44 = vmul.f32 %v1362_v4, %v920_v40  ;;  %v925_v45 = vmul.f32 %v1378_v10, %v920_v40  ;;  %s1247_s10 = sld [smem:[#allocation2 + $0x23]] }
  0x1f   :  { %v924_v46 = vmul.f32 %v1357_v3, %v920_v40  ;;  %v926_v48 = vmul.f32 %v1373_v9, %v920_v40  ;;  %v132_v49 = vmul.f32 %v128_v21, %v1454_v47  ;;  %v133_v52 = vmul.f32 %v128_v21, %v1463_v50  ;;  %s1206_s11 = sld [smem:[#allocation2 + $0x6]] }
  0x20   :  { %157 = vrot.lane.b32.xlu1 %v94_v11, %s1324_s23  ;;  %155 = vrot.lane.b32.xlu0 %v93_v12, %s1324_s23  ;;  %v134_v53 = vmul.f32 %v128_v21, %v1468_v51  ;;  %v382_v54 = vstv %s1214_s13  ;;  %v659_v61 = vstv %s1229_s17  ;;  %s1207_s12 = sld [smem:[#allocation2 + $0x7]] }
  0x21   :  { %v383_v55 = vmul.f32 %v1352_v1, %v382_v54  ;;  %v384_v56 = vmul.f32 %v1362_v4, %v382_v54  ;;  %v385_v57 = vmul.f32 %v1347_v0, %v382_v54  ;;  %v386_v58 = vmul.f32 %v1357_v3, %v382_v54  ;;  %s1204_s13 = sld [smem:[#allocation2 + $0x4]] }
  0x22   :  { %v387_v59 = vmul.f32 %v1378_v10, %v382_v54  ;;  %v388_v60 = vmul.f32 %v1373_v9, %v382_v54  ;;  %v660_v62 = vmul.f32 %v1352_v1, %v659_v61  ;;  %v661_v63 = vmul.f32 %v1362_v4, %v659_v61  ;;  %s1664_s14 = sld [smem:[#allocation2 + $0xd]] }
  0x23   :  { %v662_v2 = vmul.f32 %v1347_v0, %v659_v61  ;;  %v663_v5 = vmul.f32 %v1357_v3, %v659_v61  ;;  %v664_v6 = vmul.f32 %v1378_v10, %v659_v61  ;;  %v665_v7 = vmul.f32 %v1373_v9, %v659_v61  ;;  %s1670_s15 = sld [smem:[#allocation2 + $0xf]] }
  0x24   :  { %179 = vrot.lane.b32.xlu1 %v106_v14, %s1325_s29  ;;  %177 = vrot.lane.b32.xlu0 %v105_v15, %s1325_s29  ;;  %v936_v8 = vstv %s1244_s18  ;;  %s1677_s17 = sld [smem:[#allocation2 + $0x10]] }
  0x25   :  { %v937_v11 = vmul.f32 %v1352_v1, %v936_v8  ;;  %v938_v12 = vmul.f32 %v1362_v4, %v936_v8  ;;  %v939_v13 = vmul.f32 %v1347_v0, %v936_v8  ;;  %v940_v14 = vmul.f32 %v1357_v3, %v936_v8  ;;  %v1515_v0 = vld [vmem:[%s2539_s0] sm:$0xff]  ;;  %v1520_v3 = vld [vmem:[%s2539_s0 + $0x10] sm:$0x1]  ;;  %s1691_s22 = sld [smem:[#allocation2]] }
  0x26   :  { %v941_v15 = vmul.f32 %v1378_v10, %v936_v8  ;;  %v80_v1 = vstv %s1202_s19  ;;  %2558 = vst [vmem:[#allocation6_spill] sm:$0xff] %v1515_v0  ;;  %s1708_s27 = sld [smem:[#allocation2 + $0x1]] }
  0x27   :  { %v81_v4 = vmul.f32 %v80_v1, %v1515_v0  ;;  %v83_v10 = vmul.f32 %v80_v1, %v1520_v3  ;;  %s1772_s1 = sld [smem:[#allocation2 + $0x16]] }
  0x28   :  { %183 = vrot.lane.b32.xlu1 %v108_v16, %s1325_s29  ;;  %181 = vrot.lane.b32.xlu0 %v107_v17, %s1325_s29  ;;  %v942_v16 = vmul.f32 %v1373_v9, %v936_v8  ;;  %v1526_v9 = vld [vmem:[%s2539_s0 + $0x8] sm:$0xff]  ;;  %s1986_s28 = sld [smem:[#allocation2 + $0x21]] }
  0x29   :  { %s1996_s30 = sld [smem:[#allocation2 + $0x22]] }
  0x2a   :  { %s2001_s3 = sld [smem:[#allocation2 + $0x1f]] }
  0x2b   :  { %s2032_s4 = sld [smem:[#allocation2 + $0x9]] }
  0x2c   :  { %187 = vrot.lane.b32.xlu1 %v110_v18, %s1325_s29  ;;  %185 = vrot.lane.b32.xlu0 %v109_v19, %s1325_s29  ;;  %v1532_v19 = vld [vmem:[%s2539_s0 + $0x18] sm:$0xff] }
  0x2d   :  { %2559 = vst [vmem:[#allocation7_spill] sm:$0xff] %v1532_v19 }
  0x30   :  { %257 = vrot.lane.b32.xlu1 %v130_v23, %s1325_s29  ;;  %255 = vrot.lane.b32.xlu0 %v129_v24, %s1325_s29  ;;  %v82_v23 = vmul.f32 %v80_v1, %v1526_v9  ;;  %v1538_v24 = vld [vmem:[%s2539_s0 + $0x20] sm:$0xff] }
  0x31   :  { %2560 = vst [vmem:[#allocation8_spill] sm:$0xff] %v1538_v24 }
  0x34   :  { %425 = vrot.lane.b32.xlu1 %v367_v27, %s1324_s23  ;;  %259 = vrot.lane.b32.xlu0 %v131_v28, %s1325_s29  ;;  %v84_v27 = vmul.f32 %v80_v1, %v1532_v19 }
  0x38   :  { %429 = vrot.lane.b32.xlu1 %v369_v29, %s1324_s23  ;;  %427 = vrot.lane.b32.xlu0 %v368_v30, %s1324_s23  ;;  %v1545_v30 = vld [vmem:[%s2539_s0 + $0x28] sm:$0x1] }
  0x3c   :  { %433 = vrot.lane.b32.xlu1 %v371_v31, %s1324_s23  ;;  %431 = vrot.lane.b32.xlu0 %v370_v32, %s1324_s23  ;;  %v85_v32 = vmul.f32 %v80_v1, %v1538_v24 }
  0x40   :  { %702 = vrot.lane.b32.xlu1 %v644_v34, %s1324_s23  ;;  %435 = vrot.lane.b32.xlu0 %v372_v35, %s1324_s23  ;;  %v86_v34 = vmul.f32 %v80_v1, %v1545_v30 }
  0x44   :  { %706 = vrot.lane.b32.xlu1 %v646_v36, %s1324_s23  ;;  %704 = vrot.lane.b32.xlu0 %v645_v37, %s1324_s23 }
  0x48   :  { %710 = vrot.lane.b32.xlu1 %v648_v38, %s1324_s23  ;;  %708 = vrot.lane.b32.xlu0 %v647_v39, %s1324_s23 }
  0x4c   :  { %979 = vrot.lane.b32.xlu1 %v921_v41, %s1324_s23  ;;  %712 = vrot.lane.b32.xlu0 %v649_v42, %s1324_s23 }
  0x50   :  { %983 = vrot.lane.b32.xlu1 %v923_v43, %s1324_s23  ;;  %981 = vrot.lane.b32.xlu0 %v922_v44, %s1324_s23 }
  0x54   :  { %987 = vrot.lane.b32.xlu1 %v925_v45, %s1324_s23  ;;  %985 = vrot.lane.b32.xlu0 %v924_v46, %s1324_s23  ;;  %v358_v45 = vstv %s1211_s5  ;;  %s2037_s5 = sld [smem:[#allocation2 + $0xa]] }
  0x55   :  { %v363_v61 = vmul.f32 %v358_v45, %v1538_v24 }
  0x58   :  { %989 = vrot.lane.b32.xlu0 %v926_v48, %s1324_s23  ;;  %261 = vrot.lane.b32.xlu1 %v132_v49, %s1325_s29  ;;  %v359_v49 = vmul.f32 %v358_v45, %v1515_v0 }
  0x5c   :  { %263 = vrot.lane.b32.xlu0 %v133_v52, %s1325_s29  ;;  %265 = vrot.lane.b32.xlu1 %v134_v53, %s1325_s29 }
  0x60   :  { %455 = vrot.lane.b32.xlu0 %v383_v55, %s1325_s29  ;;  %457 = vrot.lane.b32.xlu1 %v384_v56, %s1325_s29  ;;  %v361_v55 = vmul.f32 %v358_v45, %v1520_v3  ;;  %v360_v56 = vmul.f32 %v358_v45, %v1526_v9 }
  0x64   :  { %459 = vrot.lane.b32.xlu0 %v385_v57, %s1325_s29  ;;  %461 = vrot.lane.b32.xlu1 %v386_v58, %s1325_s29 }
  0x68   :  { %463 = vrot.lane.b32.xlu0 %v387_v59, %s1325_s29  ;;  %465 = vrot.lane.b32.xlu1 %v388_v60, %s1325_s29 }
  0x6c   :  { %732 = vrot.lane.b32.xlu0 %v660_v62, %s1325_s29  ;;  %734 = vrot.lane.b32.xlu1 %v661_v63, %s1325_s29  ;;  %v362_v62 = vmul.f32 %v358_v45, %v1532_v19  ;;  %v635_v63 = vstv %s1226_s6  ;;  %s2045_s6 = sld [smem:[#allocation2 + $0x12]] }
  0x6d   :  { %v636_v8 = vmul.f32 %v635_v63, %v1515_v0  ;;  %v637_v1 = vmul.f32 %v635_v63, %v1526_v9 }
  0x70   :  { %736 = vrot.lane.b32.xlu0 %v662_v2, %s1325_s29  ;;  %738 = vrot.lane.b32.xlu1 %v663_v5, %s1325_s29 }
  0x74   :  { %740 = vrot.lane.b32.xlu0 %v664_v6, %s1325_s29  ;;  %742 = vrot.lane.b32.xlu1 %v665_v7, %s1325_s29 }
  0x78   :  { %1009 = vrot.lane.b32.xlu0 %v937_v11, %s1325_s29  ;;  %1011 = vrot.lane.b32.xlu1 %v938_v12, %s1325_s29  ;;  %v364_v11 = vmul.f32 %v358_v45, %v1545_v30 }
  0x7c   :  { %1013 = vrot.lane.b32.xlu0 %v939_v13, %s1325_s29  ;;  %1015 = vrot.lane.b32.xlu1 %v940_v14, %s1325_s29 }
  0x80   :  { %1017 = vrot.lane.b32.xlu0 %v941_v15, %s1325_s29  ;;  %1019 = vrot.lane.b32.xlu1 %v942_v16, %s1325_s29  ;;  %v638_v16 = vmul.f32 %v635_v63, %v1520_v3 }
  0x8a   :  { %v152_v17 = vpop.permute.xlu1 %151  ;;  %v148_v18 = vpop.permute.xlu0 %147 }
  0x8b   :  { %v165_v21 = vadd.f32 %v148_v18, %v81_v4  ;;  %v167_v25 = vadd.f32 %v152_v17, %v83_v10 }
  0x8d   :  { %213 = vrot.lane.b32.xlu0 %v165_v21, %s1325_s29  ;;  %v640_v21 = vmul.f32 %v635_v63, %v1538_v24 }
  0x8e   :  { %v154_v28 = vpop.permute.xlu1 %153  ;;  %v150_v29 = vpop.permute.xlu0 %149 }
  0x8f   :  { %v166_v31 = vadd.f32 %v150_v29, %v82_v23  ;;  %v168_v33 = vadd.f32 %v154_v28, %v84_v27  ;;  %v639_v23 = vmul.f32 %v635_v63, %v1532_v19 }
  0x91   :  { %215 = vrot.lane.b32.xlu1 %v166_v31, %s1325_s29  ;;  %217 = vrot.lane.b32.xlu0 %v167_v25, %s1325_s29  ;;  %v912_v25 = vstv %s1241_s7  ;;  %s2051_s7 = sld [smem:[#allocation2 + $0x13]] }
  0x92   :  { %v158_v35 = vpop.permute.xlu1 %157  ;;  %v156_v36 = vpop.permute.xlu0 %155  ;;  %v914_v45 = vmul.f32 %v912_v25, %v1526_v9 }
  0x93   :  { %v169_v37 = vadd.f32 %v156_v36, %v85_v32  ;;  %v170_v38 = vadd.f32 %v158_v35, %v86_v34  ;;  %v913_v32 = vmul.f32 %v912_v25, %v1515_v0 }
  0x95   :  { %219 = vrot.lane.b32.xlu1 %v168_v33, %s1325_s29  ;;  %221 = vrot.lane.b32.xlu0 %v169_v37, %s1325_s29  ;;  %v641_v33 = vmul.f32 %v635_v63, %v1545_v30  ;;  %v918_v63 = vmul.f32 %v912_v25, %v1545_v30 }
  0x96   :  { %v1553_v39 = vpop.permute.xlu1 %179  ;;  %v1555_v40 = vpop.permute.xlu0 %177 }
  0x99   :  { %223 = vrot.lane.b32.xlu1 %v170_v38, %s1325_s29  ;;  %v915_v38 = vmul.f32 %v912_v25, %v1520_v3 }
  0x9a   :  { %v1558_v41 = vpop.permute.xlu1 %183  ;;  %v1560_v42 = vpop.permute.xlu0 %181 }
  0x9e   :  { %v1562_v43 = vpop.permute.xlu1 %187  ;;  %v1564_v44 = vpop.permute.xlu0 %185 }
  0xa2   :  { %v1566_v46 = vpop.permute.xlu1 %257  ;;  %v1568_v48 = vpop.permute.xlu0 %255 }
  0xa6   :  { %v426_v52 = vpop.permute.xlu1 %425  ;;  %v1571_v53 = vpop.permute.xlu0 %259 }
  0xa7   :  { %2561 = vst [vmem:[#allocation9_spill] sm:$0xff] %v1571_v53  ;;  %v443_v54 = vadd.f32 %v426_v52, %v359_v49 }
  0xa9   :  { %491 = vrot.lane.b32.xlu0 %v443_v54, %s1325_s29 }
  0xaa   :  { %v430_v57 = vpop.permute.xlu1 %429  ;;  %v428_v58 = vpop.permute.xlu0 %427 }
  0xab   :  { %v445_v59 = vadd.f32 %v430_v57, %v361_v55  ;;  %v444_v60 = vadd.f32 %v428_v58, %v360_v56  ;;  %v917_v56 = vmul.f32 %v912_v25, %v1538_v24  ;;  %v916_v57 = vmul.f32 %v912_v25, %v1532_v19 }
  0xad   :  { %493 = vrot.lane.b32.xlu1 %v444_v60, %s1325_s29  ;;  %495 = vrot.lane.b32.xlu0 %v445_v59, %s1325_s29  ;;  %v406_v60 = vstv %s1217_s8  ;;  %s2107_s8 = sld [smem:[#allocation2 + $0x1b]] }
  0xae   :  { %v434_v2 = vpop.permute.xlu1 %433  ;;  %v432_v5 = vpop.permute.xlu0 %431 }
  0xaf   :  { %v447_v6 = vadd.f32 %v434_v2, %v363_v61  ;;  %v446_v7 = vadd.f32 %v432_v5, %v362_v62  ;;  %v407_v2 = vmul.f32 %v406_v60, %v1404_v22 }
  0xb1   :  { %497 = vrot.lane.b32.xlu1 %v446_v7, %s1325_s29  ;;  %499 = vrot.lane.b32.xlu0 %v447_v6, %s1325_s29 }
  0xb2   :  { %v703_v12 = vpop.permute.xlu1 %702  ;;  %v436_v13 = vpop.permute.xlu0 %435 }
  0xb3   :  { %v720_v14 = vadd.f32 %v703_v12, %v636_v8  ;;  %v448_v15 = vadd.f32 %v436_v13, %v364_v11  ;;  %v408_v8 = vmul.f32 %v406_v60, %v1399_v20  ;;  %v409_v11 = vmul.f32 %v406_v60, %v1413_v26 }
  0xb5   :  { %501 = vrot.lane.b32.xlu1 %v448_v15, %s1325_s29  ;;  %768 = vrot.lane.b32.xlu0 %v720_v14, %s1325_s29  ;;  %v410_v14 = vmul.f32 %v406_v60, %v1454_v47  ;;  %v411_v15 = vmul.f32 %v406_v60, %v1463_v50 }
  0xb6   :  { %v707_v4 = vpop.permute.xlu1 %706  ;;  %v705_v10 = vpop.permute.xlu0 %704 }
  0xb7   :  { %v722_v17 = vadd.f32 %v707_v4, %v638_v16  ;;  %v721_v18 = vadd.f32 %v705_v10, %v637_v1  ;;  %v683_v16 = vstv %s1232_s9  ;;  %v412_v10 = vmul.f32 %v406_v60, %v1468_v51  ;;  %v1684_v60 = vld [vmem:[%s2539_s0 + $0x31] sm:$0xff]  ;;  %s2119_s9 = sld [smem:[#allocation2 + $0x1c]] }
  0xb8   :  { %v686_v25 = vmul.f32 %v683_v16, %v1413_v26 }
  0xb9   :  { %770 = vrot.lane.b32.xlu1 %v721_v18, %s1325_s29  ;;  %772 = vrot.lane.b32.xlu0 %v722_v17, %s1325_s29  ;;  %v684_v17 = vmul.f32 %v683_v16, %v1404_v22 }
  0xba   :  { %v711_v27 = vpop.permute.xlu1 %710  ;;  %v709_v28 = vpop.permute.xlu0 %708 }
  0xbb   :  { %v724_v29 = vadd.f32 %v711_v27, %v640_v21  ;;  %v723_v31 = vadd.f32 %v709_v28, %v639_v23  ;;  %v685_v23 = vmul.f32 %v683_v16, %v1399_v20 }
  0xbd   :  { %774 = vrot.lane.b32.xlu1 %v723_v31, %s1325_s29  ;;  %776 = vrot.lane.b32.xlu0 %v724_v29, %s1325_s29  ;;  %v687_v29 = vmul.f32 %v683_v16, %v1454_v47  ;;  %v688_v31 = vmul.f32 %v683_v16, %v1463_v50 }
  0xbe   :  { %v980_v34 = vpop.permute.xlu1 %979  ;;  %v713_v35 = vpop.permute.xlu0 %712 }
  0xbf   :  { %v997_v36 = vadd.f32 %v980_v34, %v913_v32  ;;  %v725_v37 = vadd.f32 %v713_v35, %v641_v33  ;;  %v960_v32 = vstv %s1247_s10  ;;  %v689_v35 = vmul.f32 %v683_v16, %v1468_v51  ;;  %v1725_v16 = vld [vmem:[%s2539_s0 + $0x90] sm:$0xff] }
  0xc1   :  { %778 = vrot.lane.b32.xlu1 %v725_v37, %s1325_s29  ;;  %1045 = vrot.lane.b32.xlu0 %v997_v36, %s1325_s29  ;;  %v961_v36 = vmul.f32 %v960_v32, %v1404_v22 }
  0xc2   :  { %v984_v49 = vpop.permute.xlu1 %983  ;;  %v982_v52 = vpop.permute.xlu0 %981 }
  0xc3   :  { %v999_v54 = vadd.f32 %v984_v49, %v915_v38  ;;  %v998_v55 = vadd.f32 %v982_v52, %v914_v45  ;;  %v962_v38 = vmul.f32 %v960_v32, %v1399_v20  ;;  %v963_v45 = vmul.f32 %v960_v32, %v1413_v26 }
  0xc5   :  { %1047 = vrot.lane.b32.xlu1 %v998_v55, %s1325_s29  ;;  %1049 = vrot.lane.b32.xlu0 %v999_v54, %s1325_s29  ;;  %v964_v54 = vmul.f32 %v960_v32, %v1454_v47  ;;  %v965_v55 = vmul.f32 %v960_v32, %v1463_v50 }
  0xc6   :  { %v988_v58 = vpop.permute.xlu1 %987  ;;  %v986_v59 = vpop.permute.xlu0 %985 }
  0xc7   :  { %v1001_v61 = vadd.f32 %v988_v58, %v917_v56  ;;  %v1000_v62 = vadd.f32 %v986_v59, %v916_v57  ;;  %v1675_v56 = vld [vmem:[%s2539_s0 + $0x39] sm:$0xff]  ;;  %v112_v58 = vstv %s1206_s11  ;;  %v120_v59 = vstv %s1207_s12 }
  0xc9   :  { %1051 = vrot.lane.b32.xlu1 %v1000_v62, %s1325_s29  ;;  %1053 = vrot.lane.b32.xlu0 %v1001_v61, %s1325_s29  ;;  %v1689_v61 = vld [vmem:[%s2539_s0 + $0x49] sm:$0xff]  ;;  %v1696_v62 = vld [vmem:[%s2539_s0 + $0x41] sm:$0x1] }
  0xca   :  { %v990_v5 = vpop.permute.xlu0 %989  ;;  %v1608_v6 = vpop.permute.xlu1 %261 }
  0xcb   :  { %2562 = vst [vmem:[#allocation10_spill] sm:$0xff] %v1608_v6  ;;  %v1002_v7 = vadd.f32 %v990_v5, %v918_v63  ;;  %v1701_v63 = vld [vmem:[%s2539_s0 + $0x59] sm:$0x1] }
  0xcd   :  { %1055 = vrot.lane.b32.xlu1 %v1002_v7, %s1325_s29  ;;  %533 = vrot.lane.b32.xlu0 %v407_v2, %s1325_s29  ;;  %v966_v2 = vmul.f32 %v960_v32, %v1468_v51  ;;  %v1713_v7 = vld [vmem:[%s2539_s0 + $0x98] sm:$0xff]  ;;  %v115_v32 = vmul.f32 %v112_v58, %v1413_v26 }
  0xce   :  { %v1614_v12 = vpop.permute.xlu0 %263  ;;  %v1616_v13 = vpop.permute.xlu1 %265 }
  0xcf   :  { %2563 = vst [vmem:[#allocation11_spill] sm:$0xff] %v1614_v12  ;;  %2564 = vst [vmem:[#allocation12_spill] sm:$0xff] %v1616_v13 }
  0xd1   :  { %535 = vrot.lane.b32.xlu1 %v408_v8, %s1325_s29  ;;  %537 = vrot.lane.b32.xlu0 %v409_v11, %s1325_s29  ;;  %v96_v8 = vstv %s1204_s13  ;;  %v114_v11 = vmul.f32 %v112_v58, %v1399_v20 }
  0xd2   :  { %v1622_v1 = vpop.permute.xlu0 %455  ;;  %v1624_v4 = vpop.permute.xlu1 %457 }
  0xd3   :  { %2565 = vst [vmem:[#allocation13_spill] sm:$0xff] %v1622_v1  ;;  %2566 = vst [vmem:[#allocation14_spill] sm:$0xff] %v1624_v4  ;;  %v97_v4 = vmul.f32 %v1725_v16, %v96_v8 }
  0xd5   :  { %539 = vrot.lane.b32.xlu1 %v410_v14, %s1325_s29  ;;  %541 = vrot.lane.b32.xlu0 %v411_v15, %s1325_s29  ;;  %v122_v14 = vmul.f32 %v1675_v56, %v120_v59  ;;  %v1720_v15 = vld [vmem:[%s2539_s0 + $0x51] sm:$0xff] }
  0xd6   :  { %v1630_v18 = vpop.permute.xlu0 %459  ;;  %v1632_v21 = vpop.permute.xlu1 %461 }
  0xd7   :  { %2567 = vst [vmem:[#allocation15_spill] sm:$0xff] %v1630_v18  ;;  %2568 = vst [vmem:[#allocation16_spill] sm:$0xff] %v1632_v21  ;;  %v1763_v18 = vadd.f32 %v122_v14, %v114_v11 }
  0xd9   :  { %543 = vrot.lane.b32.xlu1 %v412_v10, %s1325_s29  ;;  %810 = vrot.lane.b32.xlu0 %v684_v17, %s1325_s29  ;;  %v113_v10 = vmul.f32 %v112_v58, %v1404_v22  ;;  %v121_v17 = vmul.f32 %v1684_v60, %v120_v59 }
  0xda   :  { %v1638_v27 = vpop.permute.xlu0 %463  ;;  %v1640_v28 = vpop.permute.xlu1 %465 }
  0xdb   :  { %2569 = vst [vmem:[#allocation17_spill] sm:$0xff] %v1638_v27  ;;  %2570 = vst [vmem:[#allocation18_spill] sm:$0xff] %v1640_v28  ;;  %v117_v28 = vmul.f32 %v112_v58, %v1463_v50  ;;  %v125_v27 = vmul.f32 %v1720_v15, %v120_v59 }
  0xdd   :  { %812 = vrot.lane.b32.xlu1 %v685_v23, %s1325_s29  ;;  %814 = vrot.lane.b32.xlu0 %v686_v25, %s1325_s29  ;;  %v1732_v23 = vld [vmem:[%s2539_s0 + $0xa8] sm:$0xff]  ;;  %v116_v25 = vmul.f32 %v112_v58, %v1454_v47 }
  0xde   :  { %v1646_v33 = vpop.permute.xlu0 %732  ;;  %v1648_v34 = vpop.permute.xlu1 %734  ;;  %v1767_v1 = vmul.f32 %v1732_v23, %v96_v8 }
  0xdf   :  { %2571 = vst [vmem:[#allocation19_spill] sm:$0xff] %v1646_v33  ;;  %2572 = vst [vmem:[#allocation20_spill] sm:$0xff] %v1648_v34  ;;  %v1823_v33 = vld [vmem:[%s2539_s0 + $0x38] sm:$0xff] }
  0xe0   :  { %2585 = vst [vmem:[#allocation33_spill] sm:$0xff] %v1823_v33 }
  0xe1   :  { %816 = vrot.lane.b32.xlu1 %v687_v29, %s1325_s29  ;;  %818 = vrot.lane.b32.xlu0 %v688_v31, %s1325_s29  ;;  %v124_v29 = vmul.f32 %v1689_v61, %v120_v59  ;;  %v1739_v31 = vld [vmem:[%s2539_s0 + $0xa0] sm:$0x1] }
  0xe2   :  { %v1654_v37 = vpop.permute.xlu0 %736  ;;  %v1660_v49 = vpop.permute.xlu1 %738 }
  0xe3   :  { %2573 = vst [vmem:[#allocation21_spill] sm:$0xff] %v1654_v37  ;;  %2574 = vst [vmem:[#allocation22_spill] sm:$0xff] %v1660_v49  ;;  %v1792_v37 = vadd.f32 %v125_v27, %v117_v28 }
  0xe5   :  { %820 = vrot.lane.b32.xlu1 %v689_v35, %s1325_s29  ;;  %1087 = vrot.lane.b32.xlu0 %v961_v36, %s1325_s29  ;;  %v123_v35 = vmul.f32 %v1696_v62, %v120_v59  ;;  %v118_v36 = vmul.f32 %v112_v58, %v1468_v51  ;;  %v1774_v58 = vadd.f32 %v121_v17, %v113_v10  ;;  %v374_v10 = vstv %s1664_s14  ;;  %v1800_v17 = vld [vmem:[%s2539_s0 + $0x30] sm:$0xff]  ;;  %s1812_s14 = sld [smem:[#allocation2 + $0x19]] }
  0xe6   :  { %v1662_v52 = vpop.permute.xlu0 %740  ;;  %v1679_v57 = vpop.permute.xlu1 %742  ;;  %2582 = vst [vmem:[#allocation30_spill] sm:$0xff] %v1792_v37  ;;  %2583 = vst [vmem:[#allocation31_spill] sm:$0xff] %v1800_v17  ;;  %v1826_v13 = vmul.f32 %v1725_v16, %v374_v10  ;;  %v1829_v12 = vmul.f32 %v1713_v7, %v374_v10  ;;  %v1836_v37 = vmul.f32 %v1739_v31, %v374_v10 }
  0xe7   :  { %2575 = vst [vmem:[#allocation23_spill] sm:$0xff] %v1662_v52  ;;  %2576 = vst [vmem:[#allocation24_spill] sm:$0xff] %v1679_v57  ;;  %v1782_v14 = vadd.f32 %v123_v35, %v115_v32 }
  0xe8   :  { %2586 = vst [vmem:[#allocation34_spill] sm:$0xff] %v1826_v13  ;;  %2587 = vst [vmem:[#allocation35_spill] sm:$0xff] %v1829_v12  ;;  %v1852_v12 = vld [vmem:[%s2539_s0 + $0x40] sm:$0x1] }
  0xe9   :  { %1089 = vrot.lane.b32.xlu1 %v962_v38, %s1325_s29  ;;  %1091 = vrot.lane.b32.xlu0 %v963_v45, %s1325_s29  ;;  %v126_v38 = vmul.f32 %v1701_v63, %v120_v59  ;;  %v1746_v45 = vmul.f32 %v1713_v7, %v96_v8  ;;  %v1776_v59 = vadd.f32 %v124_v29, %v116_v25  ;;  %v1803_v25 = vstv %s1691_s22 }
  0xea   :  { %v1706_v5 = vpop.permute.xlu0 %1009  ;;  %v1761_v21 = vpop.permute.xlu1 %1011  ;;  %v1806_v29 = vstv %s1708_s27  ;;  %2588 = vst [vmem:[#allocation36_spill] sm:$0xff] %v1836_v37 }
  0xeb   :  { %2577 = vst [vmem:[#allocation25_spill] sm:$0xff] %v1706_v5  ;;  %2578 = vst [vmem:[#allocation26_spill] sm:$0xff] %v1761_v21  ;;  %v1770_v5 = vmul.f32 %v1739_v31, %v96_v8  ;;  %v398_v21 = vstv %s1677_s17  ;;  %v1787_v52 = vadd.f32 %v126_v38, %v118_v36  ;;  %v73_v6 = vmul.f32 %v1800_v17, %v1806_v29 }
  0xec   :  { %2579 = vst [vmem:[#allocation27_spill] sm:$0xff] %v1776_v59  ;;  %v399_v35 = vmul.f32 %v1684_v60, %v398_v21  ;;  %v400_v28 = vmul.f32 %v1675_v56, %v398_v21  ;;  %v401_v36 = vmul.f32 %v1696_v62, %v398_v21 }
  0xed   :  { %1093 = vrot.lane.b32.xlu1 %v964_v54, %s1325_s29  ;;  %1095 = vrot.lane.b32.xlu0 %v965_v55, %s1325_s29  ;;  %v1751_v54 = vld [vmem:[%s2539_s0 + $0xb8] sm:$0x1]  ;;  %v1756_v55 = vld [vmem:[%s2539_s0 + $0xb0] sm:$0xff]  ;;  %2581 = vst [vmem:[#allocation29_spill] sm:$0xff] %v1787_v52  ;;  %v65_v52 = vmul.f32 %v1803_v25, %v1515_v0 }
  0xee   :  { %v1780_v11 = vpop.permute.xlu0 %1013  ;;  %v1785_v57 = vmul.f32 %v1751_v54, %v96_v8  ;;  %v1790_v49 = vmul.f32 %v1756_v55, %v96_v8  ;;  %v1818_v34 = vpop.permute.xlu1 %1015  ;;  %v1842_v53 = vmul.f32 %v1756_v55, %v374_v10  ;;  %v1857_v0 = vstv %s1772_s1 }
  0xef   :  { %2580 = vst [vmem:[#allocation28_spill] sm:$0xff] %v1780_v11  ;;  %v402_v11 = vmul.f32 %v1689_v61, %v398_v21  ;;  %2584 = vst [vmem:[#allocation32_spill] sm:$0xff] %v1818_v34  ;;  %v1839_v34 = vmul.f32 %v1732_v23, %v374_v10 }
  0xf0   :  { %2590 = vst [vmem:[#allocation38_spill] sm:$0xff] %v1842_v53  ;;  %v66_v53 = vmul.f32 %v1803_v25, %v1526_v9 }
  0xf1   :  { %1097 = vrot.lane.b32.xlu1 %v966_v2, %s1325_s29  ;;  %v390_v2 = vstv %s1670_s15  ;;  %s1795_s29 = sld [smem:[#allocation2 + $0x18]]  ;;  %2589 = vst [vmem:[#allocation37_spill] sm:$0xff] %v1839_v34  ;;  %v74_v34 = vmul.f32 %v1823_v33, %v1806_v29  ;;  %v75_v33 = vmul.f32 %v1852_v12, %v1806_v29 }
  0xf2   :  { %v391_v32 = vmul.f32 %v390_v2, %v1404_v22  ;;  %v392_v8 = vmul.f32 %v390_v2, %v1399_v20  ;;  %v393_v27 = vmul.f32 %v390_v2, %v1413_v26  ;;  %v394_v38 = vmul.f32 %v390_v2, %v1454_v47  ;;  %v1847_v59 = vpop.permute.xlu0 %1017 }
  0xf3   :  { %v1845_v13 = vmul.f32 %v390_v2, %v1463_v50  ;;  %2592 = vst [vmem:[#allocation40_spill] sm:$0xff] %v1847_v59  ;;  %v1870_v50 = vmul.f32 %v1720_v15, %v398_v21 }
  0xf4   :  { %v1854_v17 = vadd.f32 %v399_v35, %v391_v32  ;;  %v1863_v37 = vadd.f32 %v400_v28, %v392_v8  ;;  %v1867_v59 = vadd.f32 %v402_v11, %v394_v38  ;;  %v195_v32 = vadd.f32 %v1555_v40, %v97_v4  ;;  %v1880_v8 = vld [vmem:[%s2539_s0 + $0x48] sm:$0xff]  ;;  %v1885_v11 = vld [vmem:[%s2539_s0 + $0x50] sm:$0xff] }
  0xf5   :  { %2591 = vst [vmem:[#allocation39_spill] sm:$0xff] %v1845_v13  ;;  %v1865_v13 = vadd.f32 %v401_v36, %v393_v27  ;;  %2597 = vst [vmem:[#allocation45_spill] sm:$0xff] %v1870_v50  ;;  %v135_v35 = vadd.f32 %v73_v6, %v65_v52  ;;  %v1888_v27 = vmul.f32 %v1751_v54, %v374_v10  ;;  %v1900_v52 = vpop.permute.xlu1 %1019  ;;  %v1906_v36 = vstv %s1812_s14 }
  0xf6   :  { %2593 = vst [vmem:[#allocation41_spill] sm:$0xff] %v1854_v17  ;;  %2594 = vst [vmem:[#allocation42_spill] sm:$0xff] %v1863_v37  ;;  %v67_v17 = vmul.f32 %v1803_v25, %v1520_v3  ;;  %v1891_v40 = vmul.f32 %v390_v2, %v1468_v51  ;;  %v1894_v6 = vmul.f32 %v1701_v63, %v398_v21 }
  0xf7   :  { %2595 = vst [vmem:[#allocation43_spill] sm:$0xff] %v1865_v13  ;;  %2596 = vst [vmem:[#allocation44_spill] sm:$0xff] %v1867_v59  ;;  %v1898_v4 = vmul.f32 %v1725_v16, %v1857_v0  ;;  %v1903_v28 = vstv %s1795_s29  ;;  %v1910_v10 = vmul.f32 %v1713_v7, %v1857_v0  ;;  %v136_v38 = vadd.f32 %v74_v34, %v66_v53  ;;  %v1926_v34 = vld [vmem:[%s2539_s0 + $0x58] sm:$0x1] }
  0xf8   :  { %2598 = vst [vmem:[#allocation46_spill] sm:$0xff] %v1880_v8  ;;  %2599 = vst [vmem:[#allocation47_spill] sm:$0xff] %v1885_v11  ;;  %v68_v21 = vmul.f32 %v1803_v25, %v1532_v19  ;;  %v196_v59 = vadd.f32 %v1553_v39, %v1746_v45  ;;  %v237_v50 = vadd.f32 %v1774_v58, %v195_v32 }
  0xf9   :  { %2600 = vst [vmem:[#allocation48_spill] sm:$0xff] %v1888_v27  ;;  %2601 = vst [vmem:[#allocation49_spill] sm:$0xff] %v1891_v40  ;;  %v76_v27 = vmul.f32 %v1880_v8, %v1806_v29  ;;  %v77_v40 = vmul.f32 %v1885_v11, %v1806_v29  ;;  %v137_v53 = vadd.f32 %v75_v33, %v67_v17 }
  0xfa   :  { %2602 = vst [vmem:[#allocation50_spill] sm:$0xff] %v1894_v6  ;;  %2603 = vst [vmem:[#allocation51_spill] sm:$0xff] %v1900_v52  ;;  %v69_v6 = vmul.f32 %v1803_v25, %v1538_v24  ;;  %v197_v37 = vadd.f32 %v1560_v42, %v1770_v5  ;;  %v668_v52 = vmul.f32 %v1903_v28, %v1404_v22 }
  0xfb   :  { %2604 = vst [vmem:[#allocation52_spill] sm:$0xff] %v1910_v10  ;;  %v669_v10 = vmul.f32 %v1903_v28, %v1399_v20  ;;  %v1936_v39 = vmul.f32 %v1739_v31, %v1857_v0  ;;  %v676_v33 = vmul.f32 %v1684_v60, %v1906_v36  ;;  %v677_v45 = vmul.f32 %v1675_v56, %v1906_v36 }
  0xfc   :  { %v670_v58 = vmul.f32 %v1903_v28, %v1413_v26  ;;  %v138_v32 = vadd.f32 %v76_v27, %v68_v21  ;;  %v238_v11 = vadd.f32 %v1763_v18, %v196_v59  ;;  %v678_v27 = vmul.f32 %v1696_v62, %v1906_v36 }
  0xfd   :  { %2605 = vst [vmem:[#allocation53_spill] sm:$0xff] %v1936_v39  ;;  %v78_v39 = vmul.f32 %v1926_v34, %v1806_v29  ;;  %v199_v18 = vadd.f32 %v1564_v44, %v1790_v49 }
  0xff   :  { %v214_v2 = vpop.permute.xlu0 %213 }
 0x100   :  { %v231_v13 = vadd.f32 %v214_v2, %v135_v35  ;;  %v139_v35 = vadd.f32 %v77_v40, %v69_v6  ;;  %v70_v2 = vmul.f32 %v1803_v25, %v1545_v30  ;;  %v1959_v25 = vmul.f32 %v1732_v23, %v1857_v0 }
 0x102   :  { %v243_v42 = vadd.f32 %v237_v50, %v231_v13  ;;  %v198_v50 = vadd.f32 %v1558_v41, %v1767_v1  ;;  %v239_v13 = vadd.f32 %v1782_v14, %v197_v37  ;;  %v200_v41 = vadd.f32 %v1562_v43, %v1785_v57  ;;  %v2607_v43 = vld [vmem:[#allocation5_spill] sm:$0xff] }
 0x103   :  { %v216_v5 = vpop.permute.xlu1 %215  ;;  %v218_v17 = vpop.permute.xlu0 %217  ;;  %v679_v1 = vmul.f32 %v1689_v61, %v1906_v36  ;;  %v140_v6 = vadd.f32 %v78_v39, %v70_v2  ;;  %v672_v57 = vmul.f32 %v1903_v28, %v2607_v43  ;;  %v2609_v39 = vld [vmem:[#allocation30_spill] sm:$0xff] }
 0x104   :  { %v1950_v24 = vadd.f32 %v1568_v48, %v243_v42  ;;  %v232_v8 = vadd.f32 %v216_v5, %v136_v38  ;;  %v233_v19 = vadd.f32 %v218_v17, %v137_v53  ;;  %v671_v48 = vmul.f32 %v1903_v28, %v1454_v47  ;;  %v2606_v53 = vld [vmem:[#allocation27_spill] sm:$0xff] }
 0x105   :  { %v240_v42 = vadd.f32 %v2606_v53, %v198_v50  ;;  %v241_v5 = vadd.f32 %v2609_v39, %v199_v18  ;;  %v1992_v50 = vadd.f32 %v676_v33, %v668_v52  ;;  %v2611_v33 = vld [vmem:[#allocation10_spill] sm:$0xff] }
 0x106   :  { %v285_v59 = vmul.f32 %v1950_v24, %v1950_v24  ;;  %v244_v29 = vadd.f32 %v238_v11, %v232_v8  ;;  %v245_v37 = vadd.f32 %v239_v13, %v233_v19  ;;  %v1978_v8 = vmul.f32 %v1756_v55, %v1857_v0  ;;  %v2608_v19 = vld [vmem:[#allocation9_spill] sm:$0xff] }
 0x107   :  { %v220_v14 = vpop.permute.xlu1 %219  ;;  %v222_v40 = vpop.permute.xlu0 %221 }
 0x108   :  { %v291_v38 = vmul.f32 %v285_v59, %v1950_v24  ;;  %v1973_v44 = vadd.f32 %v1566_v46, %v244_v29  ;;  %v234_v49 = vadd.f32 %v220_v14, %v138_v32  ;;  %v235_v21 = vadd.f32 %v222_v40, %v139_v35  ;;  %v2610_v35 = vld [vmem:[#allocation29_spill] sm:$0xff] }
 0x109   :  { %v1983_v11 = vadd.f32 %v2608_v19, %v245_v37  ;;  %v279_v46 = vmul.f32 0.7978846, %v1950_v24  ;;  %v242_v2 = vadd.f32 %v2610_v35, %v200_v41 }
 0x10a   :  { %v297_v17 = vmul.f32 0.035677407, %v291_v38  ;;  %v286_v32 = vmul.f32 %v1973_v44, %v1973_v44  ;;  %v246_v59 = vadd.f32 %v240_v42, %v234_v49  ;;  %v247_v14 = vadd.f32 %v241_v5, %v235_v21  ;;  %v2612_v42 = vld [vmem:[#allocation11_spill] sm:$0xff] }
 0x10b   :  { %v287_v13 = vmul.f32 %v1983_v11, %v1983_v11  ;;  %v224_v29 = vpop.permute.xlu1 %223  ;;  %v1999_v38 = vadd.f32 %v677_v45, %v669_v10  ;;  %v280_v41 = vmul.f32 0.7978846, %v1973_v44  ;;  %v2011_v21 = vadd.f32 %v678_v27, %v670_v58 }
 0x10c   :  { %v303_v18 = vadd.f32 %v297_v17, %v279_v46  ;;  %v292_v37 = vmul.f32 %v286_v32, %v1973_v44  ;;  %v236_v40 = vadd.f32 %v224_v29, %v140_v6  ;;  %v2006_v53 = vadd.f32 %v2611_v33, %v246_v59 }
 0x10d   :  { %v293_v52 = vmul.f32 %v287_v13, %v1983_v11  ;;  %v2009_v19 = vadd.f32 %v2612_v42, %v247_v14  ;;  %v281_v10 = vmul.f32 0.7978846, %v1983_v11  ;;  %v2016_v5 = vadd.f32 %v679_v1, %v671_v48 }
 0x10e   :  { %1257 = vtanh.f32 %v303_v18  ;;  %v298_v49 = vmul.f32 0.035677407, %v292_v37  ;;  %v248_v39 = vadd.f32 %v242_v2, %v236_v40  ;;  %v288_v6 = vmul.f32 %v2006_v53, %v2006_v53  ;;  %v2613_v2 = vld [vmem:[#allocation12_spill] sm:$0xff] }
 0x10f   :  { %v299_v45 = vmul.f32 0.035677407, %v293_v52  ;;  %v680_v46 = vmul.f32 %v1720_v15, %v1906_v36  ;;  %v289_v32 = vmul.f32 %v2009_v19, %v2009_v19  ;;  %v673_v58 = vmul.f32 %v1903_v28, %v1468_v51 }
 0x110   :  { %v304_v17 = vadd.f32 %v298_v49, %v280_v41  ;;  %v294_v35 = vmul.f32 %v288_v6, %v2006_v53  ;;  %v2026_v13 = vadd.f32 %v2613_v2, %v248_v39  ;;  %v681_v48 = vmul.f32 %v1701_v63, %v1906_v36 }
 0x111   :  { %v305_v27 = vadd.f32 %v299_v45, %v281_v10  ;;  %v944_v1 = vstv %s1986_s28  ;;  %v295_v59 = vmul.f32 %v289_v32, %v2009_v19  ;;  %v282_v29 = vmul.f32 0.7978846, %v2006_v53 }
 0x112   :  { %1259 = vtanh.f32 %v304_v17  ;;  %v300_v28 = vmul.f32 0.035677407, %v294_v35  ;;  %v290_v18 = vmul.f32 %v2026_v13, %v2026_v13  ;;  %v2041_v37 = vmul.f32 %v1751_v54, %v1857_v0 }
 0x113   :  { %1261 = vtanh.f32 %v305_v27  ;;  %v952_v36 = vstv %s1996_s30  ;;  %v283_v14 = vmul.f32 0.7978846, %v2009_v19  ;;  %v301_v40 = vmul.f32 0.035677407, %v295_v59 }
 0x114   :  { %v2047_v41 = vadd.f32 %v680_v46, %v672_v57  ;;  %v928_v52 = vstv %s2001_s3  ;;  %v306_v33 = vadd.f32 %v300_v28, %v282_v29  ;;  %v296_v49 = vmul.f32 %v290_v18, %v2026_v13 }
 0x115   :  { %v2053_v42 = vadd.f32 %v681_v48, %v673_v58  ;;  %v945_v39 = vmul.f32 %v944_v1, %v1404_v22  ;;  %v307_v0 = vadd.f32 %v301_v40, %v283_v14  ;;  %v953_v10 = vmul.f32 %v1684_v60, %v952_v36 }
 0x116   :  { %1263 = vtanh.f32 %v306_v33  ;;  %v284_v45 = vmul.f32 0.7978846, %v2026_v13  ;;  %v302_v6 = vmul.f32 0.035677407, %v296_v49  ;;  %v2059_v57 = vmul.f32 %v1725_v16, %v928_v52  ;;  %v2617_v49 = vld [vmem:[#allocation6_spill] sm:$0xff] }
 0x117   :  { %v2062_v46 = vmul.f32 %v1713_v7, %v928_v52  ;;  %v946_v17 = vmul.f32 %v944_v1, %v1399_v20  ;;  %1265 = vtanh.f32 %v307_v0  ;;  %v954_v32 = vmul.f32 %v1675_v56, %v952_v36  ;;  %v2618_v0 = vld [vmem:[#allocation31_spill] sm:$0xff] }
 0x118   :  { %v947_v22 = vmul.f32 %v944_v1, %v1413_v26  ;;  %v955_v60 = vmul.f32 %v1696_v62, %v952_v36  ;;  %v308_v58 = vadd.f32 %v302_v6, %v284_v45  ;;  %v2069_v27 = vmul.f32 %v1739_v31, %v928_v52 }
 0x119   :  { %v2072_v16 = vmul.f32 %v1732_v23, %v928_v52  ;;  %v948_v20 = vmul.f32 %v944_v1, %v1454_v47  ;;  %v956_v7 = vmul.f32 %v1689_v61, %v952_v36  ;;  %v2076_v35 = vadd.f32 %v953_v10, %v945_v39 }
 0x11a   :  { %v2079_v26 = vmul.f32 %v1756_v55, %v928_v52  ;;  %v949_v62 = vmul.f32 %v944_v1, %v2607_v43  ;;  %1267 = vtanh.f32 %v308_v58  ;;  %v309_v2 = vmul.f32 0.5, %v1950_v24 }
 0x11b   :  { %v1258_v56 = vpop.eup %1257  ;;  %v2082_v31 = vpop.permute.xlu0 %491  ;;  %v2086_v48 = vstv %s2032_s4  ;;  %v2089_v59 = vstv %s2037_s5  ;;  %v2091_v47 = vadd.f32 %v954_v32, %v946_v17  ;;  %v2093_v61 = vadd.f32 %v955_v60, %v947_v22  ;;  %v2621_v22 = vld [vmem:[#allocation33_spill] sm:$0xff] }
 0x11c   :  { %2614 = vst [vmem:[#allocation27_spill] sm:$0xff] %v2082_v31  ;;  %v321_v23 = vadd.f32 1.0, %v1258_v56  ;;  %v2096_v29 = vstv %s2045_s6  ;;  %v2099_v55 = vstv %s2051_s7  ;;  %v2101_v28 = vadd.f32 %v956_v7, %v948_v20  ;;  %v2634_v31 = vld [vmem:[#allocation21_spill] sm:$0xff] }
 0x11d   :  { %v957_v43 = vmul.f32 %v1720_v15, %v952_v36  ;;  %v2105_v18 = vmul.f32 %v1751_v54, %v928_v52  ;;  %v950_v40 = vmul.f32 %v944_v1, %v1468_v51  ;;  %v958_v33 = vmul.f32 %v1701_v63, %v952_v36 }
 0x11e   :  { %2615 = vst [vmem:[#allocation5_spill] sm:$0xff] %v2101_v28  ;;  %v327_v24 = vmul.f32 %v321_v23, %v309_v2  ;;  %v343_v39 = vmul.f32 %v2086_v48, %v2617_v49  ;;  %v351_v10 = vmul.f32 %v2618_v0, %v2089_v59  ;;  %v310_v51 = vmul.f32 0.5, %v1973_v44  ;;  %v2633_v28 = vld [vmem:[#allocation53_spill] sm:$0xff] }
 0x11f   :  { %2616 = vst [vmem:[#allocation9_spill] sm:$0xff] %v2105_v18  ;;  %v1260_v14 = vpop.eup %1259  ;;  %v2115_v45 = vpop.permute.xlu1 %493  ;;  %v620_v1 = vmul.f32 %v2096_v29, %v2617_v49  ;;  %v628_v36 = vmul.f32 %v2618_v0, %v2099_v55  ;;  %v311_v52 = vmul.f32 0.5, %v1983_v11  ;;  %v621_v17 = vmul.f32 %v2096_v29, %v1526_v9 }
 0x120   :  { %2619 = vst [vmem:[#allocation30_spill] sm:$0xff] %v2115_v45  ;;  %v2117_v15 = vpop.permute.xlu0 %495  ;;  %v1262_v54 = vpop.eup %1261  ;;  %334 = vst.msk [vmem:[%s2541_s2] sm:$0xff] %vm333_vm0, %v327_v24  ;;  %v322_v63 = vadd.f32 1.0, %v1260_v14  ;;  %v629_v60 = vmul.f32 %v2621_v22, %v2099_v55  ;;  %v622_v44 = vmul.f32 %v2096_v29, %v1520_v3  ;;  %v630_v58 = vmul.f32 %v1852_v12, %v2099_v55  ;;  %v2626_v14 = vld [vmem:[#allocation19_spill] sm:$0xff] }
 0x121   :  { %2620 = vst [vmem:[#allocation29_spill] sm:$0xff] %v2117_v15  ;;  %v323_v6 = vadd.f32 1.0, %v1262_v54  ;;  %v2139_v20 = vadd.f32 %v957_v43, %v949_v62  ;;  %v2141_v7 = vadd.f32 %v958_v33, %v950_v40  ;;  %v2143_v11 = vadd.f32 %v351_v10, %v343_v39  ;;  %v2627_v43 = vld [vmem:[#allocation7_spill] sm:$0xff]  ;;  %v2628_v33 = vld [vmem:[#allocation46_spill] sm:$0xff] }
 0x122   :  { %v328_v32 = vmul.f32 %v322_v63, %v310_v51  ;;  %v750_v54 = vadd.f32 %v2626_v14, %v1898_v4  ;;  %v690_v62 = vadd.f32 %v628_v36, %v620_v1  ;;  %v623_v40 = vmul.f32 %v2096_v29, %v2627_v43  ;;  %v2629_v63 = vld [vmem:[#allocation8_spill] sm:$0xff]  ;;  %v2630_v36 = vld [vmem:[#allocation47_spill] sm:$0xff] }
 0x123   :  { %2622 = vst [vmem:[#allocation10_spill] sm:$0xff] %v2139_v20  ;;  %2623 = vst [vmem:[#allocation11_spill] sm:$0xff] %v2141_v7  ;;  %v329_v56 = vmul.f32 %v323_v6, %v311_v52  ;;  %v2145_v2 = vpop.permute.xlu1 %497  ;;  %v1264_v24 = vpop.eup %1263  ;;  %v631_v39 = vmul.f32 %v2628_v33, %v2099_v55  ;;  %v312_v4 = vmul.f32 0.5, %v2006_v53  ;;  %v624_v1 = vmul.f32 %v2096_v29, %v2629_v63  ;;  %v2632_v7 = vld [vmem:[#allocation20_spill] sm:$0xff] }
 0x124   :  { %2624 = vst [vmem:[#allocation12_spill] sm:$0xff] %v2145_v2  ;;  %v2147_v23 = vpop.permute.xlu0 %499  ;;  %335 = vst.msk [vmem:[%s2541_s2 + $0x8] sm:$0xff] %vm333_vm0, %v328_v32  ;;  %v1266_v10 = vpop.eup %1265  ;;  %v324_v51 = vadd.f32 1.0, %v1264_v24  ;;  %v632_v52 = vmul.f32 %v2630_v36, %v2099_v55  ;;  %v313_v6 = vmul.f32 0.5, %v2009_v19  ;;  %v691_v14 = vadd.f32 %v629_v60, %v621_v17  ;;  %v2631_v2 = vld [vmem:[#allocation52_spill] sm:$0xff] }
 0x125   :  { %2625 = vst [vmem:[#allocation6_spill] sm:$0xff] %v2147_v23  ;;  %337 = vst.msk [vmem:[%s2541_s2 + $0x10] sm:$0x1] %vm336_vm1, %v329_v56  ;;  %v325_v32 = vadd.f32 1.0, %v1266_v10  ;;  %v692_v23 = vadd.f32 %v630_v58, %v622_v44  ;;  %v751_v15 = vadd.f32 %v2632_v7, %v2631_v2  ;;  %v2174_v53 = vstv %s2107_s8  ;;  %v2635_v2 = vld [vmem:[#allocation22_spill] sm:$0xff] }
 0x126   :  { %v330_v45 = vmul.f32 %v324_v51, %v312_v4  ;;  %v2177_v24 = vstv %s2119_s9  ;;  %v792_v20 = vadd.f32 %v1992_v50, %v750_v54  ;;  %v752_v19 = vadd.f32 %v2634_v31, %v2633_v28 }
 0x127   :  { %v2171_v18 = vpop.permute.xlu1 %501  ;;  %v1268_v63 = vpop.eup %1267  ;;  %v331_v10 = vmul.f32 %v325_v32, %v313_v6  ;;  %v314_v60 = vmul.f32 0.5, %v2026_v13  ;;  %v693_v58 = vadd.f32 %v631_v39, %v623_v40  ;;  %v694_v7 = vadd.f32 %v632_v52, %v624_v1  ;;  %v2637_v52 = vld [vmem:[#allocation24_spill] sm:$0xff] }
 0x128   :  { %v769_v56 = vpop.permute.xlu0 %768  ;;  %338 = vst.msk [vmem:[%s2541_s2 + $0x60] sm:$0xff] %vm333_vm0, %v330_v45  ;;  %v326_v44 = vadd.f32 1.0, %v1268_v63  ;;  %v625_v50 = vmul.f32 %v2096_v29, %v1545_v30  ;;  %v633_v31 = vmul.f32 %v1926_v34, %v2099_v55  ;;  %v897_v28 = vmul.f32 %v2174_v53, %v2617_v49  ;;  %v2636_v29 = vld [vmem:[#allocation23_spill] sm:$0xff] }
 0x129   :  { %v786_v17 = vadd.f32 %v769_v56, %v690_v62  ;;  %339 = vst.msk [vmem:[%s2541_s2 + $0x68] sm:$0xff] %vm333_vm0, %v331_v10  ;;  %v793_v13 = vadd.f32 %v1999_v38, %v751_v15  ;;  %v753_v54 = vadd.f32 %v2635_v2, %v1959_v25  ;;  %v905_v4 = vmul.f32 %v2618_v0, %v2177_v24 }
 0x12a   :  { %v332_v62 = vmul.f32 %v326_v44, %v314_v60  ;;  %v794_v30 = vadd.f32 %v2011_v21, %v752_v19  ;;  %v754_v55 = vadd.f32 %v2636_v29, %v1978_v8  ;;  %v344_v25 = vmul.f32 %v2086_v48, %v1526_v9 }
 0x12b   :  { %v2197_v45 = vadd.f32 %v792_v20, %v786_v17  ;;  %v771_v40 = vpop.permute.xlu1 %770  ;;  %v352_v38 = vmul.f32 %v2621_v22, %v2089_v59  ;;  %v898_v0 = vmul.f32 %v2174_v53, %v1526_v9  ;;  %v906_v21 = vmul.f32 %v2621_v22, %v2177_v24  ;;  %v1305_v17 = vld [vmem:[%s2539_s0 + $0x10] sm:$0x1] }
 0x12c   :  { %v773_v39 = vpop.permute.xlu0 %772  ;;  %v787_v51 = vadd.f32 %v771_v40, %v691_v14  ;;  %340 = vst.msk [vmem:[%s2541_s2 + $0x70] sm:$0x1] %vm336_vm1, %v332_v62  ;;  %v899_v8 = vmul.f32 %v2174_v53, %v1520_v3  ;;  %v907_v15 = vmul.f32 %v1852_v12, %v2177_v24  ;;  %v795_v1 = vadd.f32 %v2016_v5, %v753_v54  ;;  %v2638_v3 = vld [vmem:[#allocation25_spill] sm:$0xff]  ;;  %v2640_v40 = vld [vmem:[#allocation28_spill] sm:$0xff] }
 0x12d   :  { %v788_v49 = vadd.f32 %v773_v39, %v692_v23  ;;  %v755_v6 = vadd.f32 %v2637_v52, %v2041_v37  ;;  %v695_v14 = vadd.f32 %v633_v31, %v625_v50  ;;  %v967_v56 = vadd.f32 %v905_v4, %v897_v28  ;;  %v2639_v31 = vld [vmem:[#allocation26_spill] sm:$0xff] }
 0x12e   :  { %v2223_v20 = vadd.f32 %v793_v13, %v787_v51  ;;  %v796_v22 = vadd.f32 %v2047_v41, %v754_v55  ;;  %v1027_v63 = vadd.f32 %v2638_v3, %v2059_v57  ;;  %v345_v5 = vmul.f32 %v1305_v17, %v2086_v48 }
 0x12f   :  { %v2225_v23 = vadd.f32 %v794_v30, %v788_v49  ;;  %v775_v32 = vpop.permute.xlu1 %774  ;;  %v353_v37 = vmul.f32 %v1852_v12, %v2089_v59  ;;  %v900_v60 = vmul.f32 %v2174_v53, %v2627_v43  ;;  %v908_v41 = vmul.f32 %v2628_v33, %v2177_v24  ;;  %v1306_v12 = vld [vmem:[%s2539_s0 + $0x20] sm:$0xff] }
 0x130   :  { %v777_v9 = vpop.permute.xlu0 %776  ;;  %v789_v19 = vadd.f32 %v775_v32, %v693_v58  ;;  %v968_v44 = vadd.f32 %v906_v21, %v898_v0  ;;  %v969_v50 = vadd.f32 %v907_v15, %v899_v8  ;;  %v1028_v28 = vadd.f32 %v2639_v31, %v2062_v46  ;;  %v1307_v46 = vld [vmem:[%s2539_s0 + $0x18] sm:$0xff]  ;;  %v2641_v0 = vld [vmem:[#allocation34_spill] sm:$0xff]  ;;  %v2642_v21 = vld [vmem:[#allocation13_spill] sm:$0xff] }
 0x131   :  { %v790_v10 = vadd.f32 %v777_v9, %v694_v7  ;;  %v797_v7 = vadd.f32 %v2053_v42, %v755_v6  ;;  %v901_v43 = vmul.f32 %v1306_v12, %v2174_v53  ;;  %v909_v54 = vmul.f32 %v2630_v36, %v2177_v24  ;;  %v2644_v9 = vld [vmem:[#allocation40_spill] sm:$0xff]  ;;  %v2651_v31 = vld [vmem:[#allocation5_spill] sm:$0xff] }
 0x132   :  { %v2243_v57 = vadd.f32 %v795_v1, %v789_v19  ;;  %v1069_v62 = vadd.f32 %v2076_v35, %v1027_v63  ;;  %v1029_v39 = vadd.f32 %v2640_v40, %v2069_v27  ;;  %v414_v30 = vadd.f32 %v352_v38, %v344_v25  ;;  %v1308_v35 = vld [vmem:[%s2539_s0 + $0x28] sm:$0x1]  ;;  %v2645_v19 = vld [vmem:[#allocation27_spill] sm:$0xff] }
 0x133   :  { %v2245_v58 = vadd.f32 %v796_v22, %v790_v10  ;;  %v779_v13 = vpop.permute.xlu1 %778  ;;  %v346_v29 = vmul.f32 %v1307_v46, %v2086_v48  ;;  %v354_v55 = vmul.f32 %v2628_v33, %v2089_v59  ;;  %v970_v51 = vadd.f32 %v908_v41, %v900_v60  ;;  %v2643_v33 = vld [vmem:[#allocation32_spill] sm:$0xff] }
 0x134   :  { %v1046_v2 = vpop.permute.xlu0 %1045  ;;  %v791_v42 = vadd.f32 %v779_v13, %v695_v14  ;;  %v902_v49 = vmul.f32 %v1308_v35, %v2174_v53  ;;  %v910_v27 = vmul.f32 %v1926_v34, %v2177_v24  ;;  %v473_v8 = vadd.f32 %v2642_v21, %v2641_v0 }
 0x135   :  { %v1063_v4 = vadd.f32 %v1046_v2, %v967_v56  ;;  %v1070_v15 = vadd.f32 %v2091_v47, %v1028_v28  ;;  %v1030_v1 = vadd.f32 %v2643_v33, %v2072_v16  ;;  %v971_v32 = vadd.f32 %v909_v54, %v901_v43  ;;  %v2652_v2 = vld [vmem:[#allocation10_spill] sm:$0xff]  ;;  %v2654_v43 = vld [vmem:[#allocation51_spill] sm:$0xff] }
 0x136   :  { %v2271_v25 = vadd.f32 %v797_v7, %v791_v42  ;;  %v1071_v53 = vadd.f32 %v2093_v61, %v1029_v39  ;;  %v1031_v24 = vadd.f32 %v2644_v9, %v2079_v26  ;;  %v415_v22 = vadd.f32 %v353_v37, %v345_v5  ;;  %v2646_v61 = vld [vmem:[#allocation41_spill] sm:$0xff]  ;;  %v2647_v26 = vld [vmem:[#allocation35_spill] sm:$0xff]  ;;  %v2649_v5 = vld [vmem:[#allocation36_spill] sm:$0xff] }
 0x137   :  { %v2273_v38 = vadd.f32 %v1069_v62, %v1063_v4  ;;  %v1048_v52 = vpop.permute.xlu1 %1047  ;;  %v416_v3 = vadd.f32 %v354_v55, %v346_v29  ;;  %v347_v63 = vmul.f32 %v1306_v12, %v2086_v48  ;;  %v355_v47 = vmul.f32 %v2630_v36, %v2089_v59  ;;  %v2650_v37 = vld [vmem:[#allocation15_spill] sm:$0xff]  ;;  %v2655_v39 = vld [vmem:[#allocation30_spill] sm:$0xff]  ;;  %v2656_v55 = vld [vmem:[#allocation29_spill] sm:$0xff] }
 0x138   :  { %v1050_v6 = vpop.permute.xlu0 %1049  ;;  %v1064_v14 = vadd.f32 %v1048_v52, %v968_v44  ;;  %v509_v16 = vadd.f32 %v2645_v19, %v2143_v11  ;;  %v972_v10 = vadd.f32 %v910_v27, %v902_v49  ;;  %v515_v41 = vadd.f32 %v2646_v61, %v473_v8  ;;  %v2648_v44 = vld [vmem:[#allocation14_spill] sm:$0xff]  ;;  %v2653_v11 = vld [vmem:[#allocation9_spill] sm:$0xff]  ;;  %v2658_v33 = vld [vmem:[#allocation43_spill] sm:$0xff] }
 0x139   :  { %v1065_v56 = vadd.f32 %v1050_v6, %v969_v50  ;;  %v474_v50 = vadd.f32 %v2648_v44, %v2647_v26  ;;  %v475_v7 = vadd.f32 %v2650_v37, %v2649_v5  ;;  %v1072_v28 = vadd.f32 %v2651_v31, %v1030_v1  ;;  %v2657_v8 = vld [vmem:[#allocation42_spill] sm:$0xff]  ;;  %v2659_v1 = vld [vmem:[#allocation37_spill] sm:$0xff]  ;;  %v2660_v52 = vld [vmem:[#allocation16_spill] sm:$0xff] }
 0x13a   :  { %v2288_v17 = vadd.f32 %v1070_v15, %v1064_v14  ;;  %v1073_v12 = vadd.f32 %v2652_v2, %v1031_v24  ;;  %v1032_v54 = vadd.f32 %v2654_v43, %v2653_v11  ;;  %v510_v42 = vadd.f32 %v2655_v39, %v414_v30  ;;  %v2661_v6 = vld [vmem:[#allocation39_spill] sm:$0xff]  ;;  %v2667_v61 = vld [vmem:[#allocation6_spill] sm:$0xff]  ;;  %v2668_v5 = vld [vmem:[#allocation44_spill] sm:$0xff] }
 0x13b   :  { %v2290_v60 = vadd.f32 %v1071_v53, %v1065_v56  ;;  %v1052_v13 = vpop.permute.xlu1 %1051  ;;  %v417_v4 = vadd.f32 %v355_v47, %v347_v63  ;;  %v348_v46 = vmul.f32 %v1308_v35, %v2086_v48  ;;  %v356_v29 = vmul.f32 %v1926_v34, %v2089_v59  ;;  %v2663_v34 = vld [vmem:[#allocation38_spill] sm:$0xff]  ;;  %v2664_v59 = vld [vmem:[#allocation17_spill] sm:$0xff]  ;;  %v2665_v24 = vld [vmem:[#allocation11_spill] sm:$0xff] }
 0x13c   :  { %v1054_v36 = vpop.permute.xlu0 %1053  ;;  %v1066_v62 = vadd.f32 %v1052_v13, %v970_v51  ;;  %v511_v49 = vadd.f32 %v2656_v55, %v415_v22  ;;  %v521_v27 = vadd.f32 %v515_v41, %v509_v16  ;;  %v516_v15 = vadd.f32 %v2657_v8, %v474_v50  ;;  %v2666_v63 = vld [vmem:[#allocation12_spill] sm:$0xff]  ;;  %v2670_v31 = vld [vmem:[#allocation50_spill] sm:$0xff] }
 0x13d   :  { %v1067_v40 = vadd.f32 %v1054_v36, %v971_v32  ;;  %v517_v51 = vadd.f32 %v2658_v33, %v475_v7  ;;  %v476_v30 = vadd.f32 %v2660_v52, %v2659_v1  ;;  %v2662_v32 = vld [vmem:[#allocation45_spill] sm:$0xff]  ;;  %v477_v9 = vadd.f32 %v2664_v59, %v2663_v34  ;;  %v2672_v13 = vld [vmem:[#allocation18_spill] sm:$0xff] }
 0x13e   :  { %v2306_v0 = vadd.f32 %v1072_v28, %v1066_v62  ;;  %v483_v48 = vadd.f32 %v2662_v32, %v2661_v6  ;;  %v1074_v14 = vadd.f32 %v2665_v24, %v1032_v54  ;;  %v512_v47 = vadd.f32 %v2666_v63, %v416_v3  ;;  %v2669_v7 = vld [vmem:[#allocation49_spill] sm:$0xff] }
 0x13f   :  { %v2308_v21 = vadd.f32 %v1073_v12, %v1067_v40  ;;  %v1056_v35 = vpop.permute.xlu1 %1055  ;;  %v418_v19 = vadd.f32 %v356_v29, %v348_v46  ;;  %v522_v16 = vadd.f32 %v516_v15, %v510_v42  ;;  %v513_v41 = vadd.f32 %v2667_v61, %v417_v4 }
 0x140   :  { %v534_v53 = vpop.permute.xlu0 %533  ;;  %v1068_v56 = vadd.f32 %v1056_v35, %v972_v10  ;;  %v523_v44 = vadd.f32 %v517_v51, %v511_v49  ;;  %v518_v37 = vadd.f32 %v2668_v5, %v476_v30  ;;  %v484_v28 = vadd.f32 %v2670_v31, %v2669_v7  ;;  %v2671_v10 = vld [vmem:[#allocation48_spill] sm:$0xff] }
 0x141   :  { %v2319_v22 = vadd.f32 %v534_v53, %v521_v27  ;;  %v478_v36 = vadd.f32 %v2672_v13, %v2671_v10  ;;  %v519_v12 = vadd.f32 %v483_v48, %v477_v9  ;;  %v514_v62 = vadd.f32 %v2171_v18, %v418_v19 }
 0x142   :  { %v2325_v50 = vadd.f32 %v1074_v14, %v1068_v56  ;;  %v524_v40 = vadd.f32 %v518_v37, %v512_v47 }
 0x143   :  { %v563_v26 = vmul.f32 %v2319_v22, %v2319_v22  ;;  %v536_v2 = vpop.permute.xlu1 %535  ;;  %v557_v39 = vmul.f32 0.7978846, %v2319_v22  ;;  %v525_v46 = vadd.f32 %v519_v12, %v513_v41  ;;  %v520_v29 = vadd.f32 %v484_v28, %v478_v36 }
 0x144   :  { %v538_v3 = vpop.permute.xlu0 %537  ;;  %v2333_v43 = vadd.f32 %v536_v2, %v522_v16 }
 0x145   :  { %v569_v11 = vmul.f32 %v563_v26, %v2319_v22  ;;  %v2335_v54 = vadd.f32 %v538_v3, %v523_v44  ;;  %v526_v1 = vadd.f32 %v520_v29, %v514_v62 }
 0x146   :  { %v564_v4 = vmul.f32 %v2333_v43, %v2333_v43  ;;  %v558_v52 = vmul.f32 0.7978846, %v2333_v43 }
 0x147   :  { %v575_v42 = vmul.f32 0.035677407, %v569_v11  ;;  %v565_v55 = vmul.f32 %v2335_v54, %v2335_v54  ;;  %v540_v49 = vpop.permute.xlu1 %539  ;;  %v559_v32 = vmul.f32 0.7978846, %v2335_v54 }
 0x148   :  { %v542_v27 = vpop.permute.xlu0 %541  ;;  %v570_v15 = vmul.f32 %v564_v4, %v2333_v43  ;;  %v2344_v33 = vadd.f32 %v540_v49, %v524_v40  ;;  %v587_v4 = vmul.f32 0.5, %v2319_v22  ;;  %v588_v49 = vmul.f32 0.5, %v2333_v43 }
 0x149   :  { %v581_v8 = vadd.f32 %v575_v42, %v557_v39  ;;  %v2346_v18 = vadd.f32 %v542_v27, %v525_v46  ;;  %v571_v51 = vmul.f32 %v565_v55, %v2335_v54 }
 0x14a   :  { %v576_v30 = vmul.f32 0.035677407, %v570_v15  ;;  %v566_v6 = vmul.f32 %v2344_v33, %v2344_v33  ;;  %v560_v47 = vmul.f32 0.7978846, %v2344_v33 }
 0x14b   :  { %1269 = vtanh.f32 %v581_v8  ;;  %v577_v48 = vmul.f32 0.035677407, %v571_v51  ;;  %v567_v35 = vmul.f32 %v2346_v18, %v2346_v18  ;;  %v544_v53 = vpop.permute.xlu1 %543  ;;  %v561_v61 = vmul.f32 0.7978846, %v2346_v18 }
 0x14c   :  { %v811_v34 = vpop.permute.xlu0 %810  ;;  %v582_v59 = vadd.f32 %v576_v30, %v558_v52  ;;  %v572_v9 = vmul.f32 %v566_v6, %v2344_v33  ;;  %v2356_v24 = vadd.f32 %v544_v53, %v526_v1  ;;  %v589_v52 = vmul.f32 0.5, %v2335_v54 }
 0x14d   :  { %v583_v14 = vadd.f32 %v577_v48, %v559_v32  ;;  %v573_v56 = vmul.f32 %v567_v35, %v2346_v18  ;;  %v2360_v63 = vadd.f32 %v811_v34, %v2197_v45 }
 0x14e   :  { %1271 = vtanh.f32 %v582_v59  ;;  %v578_v19 = vmul.f32 0.035677407, %v572_v9  ;;  %v568_v16 = vmul.f32 %v2356_v24, %v2356_v24  ;;  %v562_v10 = vmul.f32 0.7978846, %v2356_v24 }
 0x14f   :  { %1273 = vtanh.f32 %v583_v14  ;;  %v579_v41 = vmul.f32 0.035677407, %v573_v56  ;;  %v813_v26 = vpop.permute.xlu1 %812  ;;  %v840_v45 = vmul.f32 %v2360_v63, %v2360_v63  ;;  %v834_v62 = vmul.f32 0.7978846, %v2360_v63 }
 0x150   :  { %v815_v44 = vpop.permute.xlu0 %814  ;;  %v584_v5 = vadd.f32 %v578_v19, %v560_v47  ;;  %v574_v37 = vmul.f32 %v568_v16, %v2356_v24  ;;  %v2370_v31 = vadd.f32 %v813_v26, %v2223_v20 }
 0x151   :  { %v585_v7 = vadd.f32 %v579_v41, %v561_v61  ;;  %v2373_v28 = vadd.f32 %v815_v44, %v2225_v23  ;;  %v846_v36 = vmul.f32 %v840_v45, %v2360_v63  ;;  %v591_v44 = vmul.f32 0.5, %v2346_v18 }
 0x152   :  { %1275 = vtanh.f32 %v584_v5  ;;  %v580_v13 = vmul.f32 0.035677407, %v574_v37  ;;  %v841_v2 = vmul.f32 %v2370_v31, %v2370_v31  ;;  %v835_v27 = vmul.f32 0.7978846, %v2370_v31 }
 0x153   :  { %1277 = vtanh.f32 %v585_v7  ;;  %v817_v3 = vpop.permute.xlu1 %816  ;;  %v852_v20 = vmul.f32 0.035677407, %v846_v36  ;;  %v842_v23 = vmul.f32 %v2373_v28, %v2373_v28 }
 0x154   :  { %v819_v12 = vpop.permute.xlu0 %818  ;;  %v586_v11 = vadd.f32 %v580_v13, %v562_v10  ;;  %v847_v40 = vmul.f32 %v841_v2, %v2370_v31  ;;  %v2384_v39 = vadd.f32 %v817_v3, %v2243_v57 }
 0x155   :  { %v2387_v42 = vadd.f32 %v819_v12, %v2245_v58  ;;  %v858_v46 = vadd.f32 %v852_v20, %v834_v62  ;;  %v848_v29 = vmul.f32 %v842_v23, %v2373_v28  ;;  %v836_v58 = vmul.f32 0.7978846, %v2373_v28 }
 0x156   :  { %1279 = vtanh.f32 %v586_v11  ;;  %v853_v8 = vmul.f32 0.035677407, %v847_v40  ;;  %v843_v15 = vmul.f32 %v2384_v39, %v2384_v39  ;;  %v837_v59 = vmul.f32 0.7978846, %v2384_v39 }
 0x157   :  { %v821_v57 = vpop.permute.xlu1 %820  ;;  %1281 = vtanh.f32 %v858_v46  ;;  %v854_v22 = vmul.f32 0.035677407, %v848_v29  ;;  %v844_v43 = vmul.f32 %v2387_v42, %v2387_v42  ;;  %v838_v61 = vmul.f32 0.7978846, %v2387_v42 }
 0x158   :  { %v1270_v55 = vpop.eup %1269  ;;  %v1088_v51 = vpop.permute.xlu0 %1087  ;;  %v859_v30 = vadd.f32 %v853_v8, %v835_v27  ;;  %v849_v6 = vmul.f32 %v843_v15, %v2384_v39  ;;  %v2401_v35 = vadd.f32 %v821_v57, %v2271_v25  ;;  %v590_v25 = vmul.f32 0.5, %v2344_v33 }
 0x159   :  { %v599_v1 = vadd.f32 1.0, %v1270_v55  ;;  %v860_v48 = vadd.f32 %v854_v22, %v836_v58  ;;  %v2404_v53 = vadd.f32 %v1088_v51, %v2273_v38  ;;  %v850_v54 = vmul.f32 %v844_v43, %v2387_v42 }
 0x15a   :  { %1283 = vtanh.f32 %v859_v30  ;;  %v855_v9 = vmul.f32 0.035677407, %v849_v6  ;;  %v845_v38 = vmul.f32 %v2401_v35, %v2401_v35  ;;  %v839_v13 = vmul.f32 0.7978846, %v2401_v35 }
 0x15b   :  { %v605_v32 = vmul.f32 %v599_v1, %v587_v4  ;;  %v1272_v34 = vpop.eup %1271  ;;  %v1090_v14 = vpop.permute.xlu1 %1089  ;;  %1285 = vtanh.f32 %v860_v48  ;;  %v856_v41 = vmul.f32 0.035677407, %v850_v54  ;;  %v1117_v37 = vmul.f32 %v2404_v53, %v2404_v53 }
 0x15c   :  { %v1274_v56 = vpop.eup %1273  ;;  %v600_v47 = vadd.f32 1.0, %v1272_v34  ;;  %v861_v16 = vadd.f32 %v855_v9, %v837_v59  ;;  %v851_v5 = vmul.f32 %v845_v38, %v2401_v35  ;;  %v1092_v45 = vpop.permute.xlu0 %1091  ;;  %v2427_v11 = vadd.f32 %v1090_v14, %v2288_v17 }
 0x15d   :  { %1218 = vst.msk [vmem:[%s2541_s2 + $0x18] sm:$0xff] %vm333_vm0, %v605_v32  ;;  %v601_v19 = vadd.f32 1.0, %v1274_v56  ;;  %v862_v10 = vadd.f32 %v856_v41, %v838_v61  ;;  %v1123_v12 = vmul.f32 %v1117_v37, %v2404_v53  ;;  %v2434_v20 = vadd.f32 %v1092_v45, %v2290_v60 }
 0x15e   :  { %v606_v26 = vmul.f32 %v600_v47, %v588_v49  ;;  %1287 = vtanh.f32 %v861_v16  ;;  %v857_v3 = vmul.f32 0.035677407, %v851_v5  ;;  %v1111_v46 = vmul.f32 0.7978846, %v2404_v53 }
 0x15f   :  { %v1276_v7 = vpop.eup %1275  ;;  %v607_v33 = vmul.f32 %v601_v19, %v589_v52  ;;  %v1094_v36 = vpop.permute.xlu1 %1093  ;;  %1289 = vtanh.f32 %v862_v10  ;;  %v1129_v29 = vmul.f32 0.035677407, %v1123_v12  ;;  %v592_v49 = vmul.f32 0.5, %v2356_v24 }
 0x160   :  { %v1278_v2 = vpop.eup %1277  ;;  %1219 = vst.msk [vmem:[%s2541_s2 + $0x20] sm:$0xff] %vm333_vm0, %v606_v26  ;;  %v602_v18 = vadd.f32 1.0, %v1276_v7  ;;  %v2437_v23 = vadd.f32 %v1094_v36, %v2306_v0  ;;  %v863_v4 = vadd.f32 %v857_v3, %v839_v13  ;;  %v1118_v27 = vmul.f32 %v2427_v11, %v2427_v11  ;;  %v1096_v15 = vpop.permute.xlu0 %1095 }
 0x161   :  { %1220 = vst.msk [vmem:[%s2541_s2 + $0x28] sm:$0x1] %vm336_vm1, %v607_v33  ;;  %v603_v62 = vadd.f32 1.0, %v1278_v2  ;;  %v1135_v0 = vadd.f32 %v1129_v29, %v1111_v46  ;;  %v1119_v8 = vmul.f32 %v2434_v20, %v2434_v20  ;;  %v864_v24 = vmul.f32 0.5, %v2360_v63 }
 0x162   :  { %v608_v40 = vmul.f32 %v602_v18, %v590_v25  ;;  %1291 = vtanh.f32 %v863_v4  ;;  %v865_v51 = vmul.f32 0.5, %v2370_v31  ;;  %v1124_v1 = vmul.f32 %v1118_v27, %v2427_v11 }
 0x163   :  { %v1280_v17 = vpop.eup %1279  ;;  %v609_v55 = vmul.f32 %v603_v62, %v591_v44  ;;  %v1120_v58 = vmul.f32 %v2437_v23, %v2437_v23  ;;  %v1098_v22 = vpop.permute.xlu1 %1097  ;;  %1293 = vtanh.f32 %v1135_v0  ;;  %v1125_v6 = vmul.f32 %v1119_v8, %v2434_v20 }
 0x164   :  { %1221 = vst.msk [vmem:[%s2541_s2 + $0x78] sm:$0xff] %vm333_vm0, %v608_v40  ;;  %v604_v60 = vadd.f32 1.0, %v1280_v17  ;;  %v1282_v57 = vpop.eup %1281  ;;  %v1112_v43 = vmul.f32 0.7978846, %v2427_v11  ;;  %v1130_v32 = vmul.f32 0.035677407, %v1124_v1  ;;  %v2462_v63 = vadd.f32 %v1096_v15, %v2308_v21 }
 0x165   :  { %1222 = vst.msk [vmem:[%s2541_s2 + $0x80] sm:$0xff] %vm333_vm0, %v609_v55  ;;  %v876_v30 = vadd.f32 1.0, %v1282_v57  ;;  %v1126_v48 = vmul.f32 %v1120_v58, %v2437_v23  ;;  %v1113_v59 = vmul.f32 0.7978846, %v2434_v20  ;;  %v1131_v9 = vmul.f32 0.035677407, %v1125_v6 }
 0x166   :  { %v610_v52 = vmul.f32 %v604_v60, %v592_v49  ;;  %v2470_v54 = vadd.f32 %v1098_v22, %v2325_v50  ;;  %v1136_v47 = vadd.f32 %v1130_v32, %v1112_v43  ;;  %v1114_v25 = vmul.f32 0.7978846, %v2437_v23 }
 0x167   :  { %v1284_v31 = vpop.eup %1283  ;;  %v882_v34 = vmul.f32 %v876_v30, %v864_v24  ;;  %v1132_v21 = vmul.f32 0.035677407, %v1126_v48  ;;  %v866_v38 = vmul.f32 0.5, %v2373_v28  ;;  %v1137_v16 = vadd.f32 %v1131_v9, %v1113_v59 }
 0x168   :  { %1223 = vst.msk [vmem:[%s2541_s2 + $0x88] sm:$0x1] %vm336_vm1, %v610_v52  ;;  %v1286_v14 = vpop.eup %1285  ;;  %v877_v56 = vadd.f32 1.0, %v1284_v31  ;;  %v1121_v61 = vmul.f32 %v2462_v63, %v2462_v63  ;;  %1295 = vtanh.f32 %v1136_v47  ;;  %v1122_v37 = vmul.f32 %v2470_v54, %v2470_v54 }
 0x169   :  { %1233 = vst.msk [vmem:[%s2541_s2 + $0x30] sm:$0xff] %vm333_vm0, %v882_v34  ;;  %v878_v19 = vadd.f32 1.0, %v1286_v14  ;;  %v1138_v41 = vadd.f32 %v1132_v21, %v1114_v25  ;;  %1297 = vtanh.f32 %v1137_v16  ;;  %v867_v28 = vmul.f32 0.5, %v2384_v39 }
 0x16a   :  { %v883_v50 = vmul.f32 %v877_v56, %v865_v51  ;;  %v1127_v5 = vmul.f32 %v1121_v61, %v2462_v63  ;;  %v1115_v33 = vmul.f32 0.7978846, %v2462_v63  ;;  %v1128_v13 = vmul.f32 %v1122_v37, %v2470_v54 }
 0x16b   :  { %v1288_v26 = vpop.eup %1287  ;;  %v884_v44 = vmul.f32 %v878_v19, %v866_v38  ;;  %1299 = vtanh.f32 %v1138_v41  ;;  %v868_v2 = vmul.f32 0.5, %v2387_v42  ;;  %v1116_v39 = vmul.f32 0.7978846, %v2470_v54 }
 0x16c   :  { %1234 = vst.msk [vmem:[%s2541_s2 + $0x38] sm:$0xff] %vm333_vm0, %v883_v50  ;;  %v879_v45 = vadd.f32 1.0, %v1288_v26  ;;  %v1290_v7 = vpop.eup %1289  ;;  %v1133_v10 = vmul.f32 0.035677407, %v1127_v5  ;;  %v1134_v12 = vmul.f32 0.035677407, %v1128_v13 }
 0x16d   :  { %1235 = vst.msk [vmem:[%s2541_s2 + $0x40] sm:$0x1] %vm336_vm1, %v884_v44  ;;  %v880_v18 = vadd.f32 1.0, %v1290_v7  ;;  %v869_v4 = vmul.f32 0.5, %v2401_v35  ;;  %v1141_v55 = vmul.f32 0.5, %v2404_v53  ;;  %v1142_v0 = vmul.f32 0.5, %v2427_v11 }
 0x16e   :  { %v885_v36 = vmul.f32 %v879_v45, %v867_v28  ;;  %v1139_v3 = vadd.f32 %v1133_v10, %v1115_v33  ;;  %v1140_v29 = vadd.f32 %v1134_v12, %v1116_v39  ;;  %v1143_v53 = vmul.f32 0.5, %v2434_v20 }
 0x16f   :  { %v1292_v62 = vpop.eup %1291  ;;  %v886_v40 = vmul.f32 %v880_v18, %v868_v2  ;;  %v1144_v51 = vmul.f32 0.5, %v2437_v23  ;;  %v1145_v20 = vmul.f32 0.5, %v2462_v63  ;;  %v1146_v6 = vmul.f32 0.5, %v2470_v54 }
 0x170   :  { %1236 = vst.msk [vmem:[%s2541_s2 + $0x90] sm:$0xff] %vm333_vm0, %v885_v36  ;;  %v881_v46 = vadd.f32 1.0, %v1292_v62  ;;  %1301 = vtanh.f32 %v1139_v3  ;;  %v1294_v17 = vpop.eup %1293 }
 0x171   :  { %1237 = vst.msk [vmem:[%s2541_s2 + $0x98] sm:$0xff] %vm333_vm0, %v886_v40  ;;  %v1153_v49 = vadd.f32 1.0, %v1294_v17  ;;  %1303 = vtanh.f32 %v1140_v29 }
 0x172   :  { %v887_v42 = vmul.f32 %v881_v46, %v869_v4 }
 0x173   :  { %v1159_v35 = vmul.f32 %v1153_v49, %v1141_v55 }
 0x174   :  { %1238 = vst.msk [vmem:[%s2541_s2 + $0xa0] sm:$0x1] %vm336_vm1, %v887_v42 }
 0x175   :  { %v1296_v27 = vpop.eup %1295  ;;  %1248 = vst.msk [vmem:[%s2541_s2 + $0x48] sm:$0xff] %vm333_vm0, %v1159_v35 }
 0x176   :  { %v1298_v60 = vpop.eup %1297  ;;  %v1154_v8 = vadd.f32 1.0, %v1296_v27 }
 0x177   :  { %v1155_v57 = vadd.f32 1.0, %v1298_v60 }
 0x178   :  { %v1300_v15 = vpop.eup %1299  ;;  %v1160_v24 = vmul.f32 %v1154_v8, %v1142_v0 }
 0x179   :  { %v1156_v1 = vadd.f32 1.0, %v1300_v15  ;;  %v1161_v58 = vmul.f32 %v1155_v57, %v1143_v53 }
 0x17a   :  { %1249 = vst.msk [vmem:[%s2541_s2 + $0x50] sm:$0xff] %vm333_vm0, %v1160_v24 }
 0x17b   :  { %v1162_v22 = vmul.f32 %v1156_v1, %v1144_v51  ;;  %1250 = vst.msk [vmem:[%s2541_s2 + $0x58] sm:$0x1] %vm336_vm1, %v1161_v58 }
 0x17d   :  { %v1302_v11 = vpop.eup %1301  ;;  %1251 = vst.msk [vmem:[%s2541_s2 + $0xa8] sm:$0xff] %vm333_vm0, %v1162_v22 }
 0x17e   :  { %v1157_v23 = vadd.f32 1.0, %v1302_v11  ;;  %v1304_v52 = vpop.eup %1303 }
 0x17f   :  { %v1158_v43 = vadd.f32 1.0, %v1304_v52 }
 0x180   :  { %v1163_v30 = vmul.f32 %v1157_v23, %v1145_v20 }
 0x181   :  { %v1164_v32 = vmul.f32 %v1158_v43, %v1146_v6 }
 0x182   :  { %1252 = vst.msk [vmem:[%s2541_s2 + $0xb0] sm:$0xff] %vm333_vm0, %v1163_v30 }
 0x183   :  { %1253 = vst.msk [vmem:[%s2541_s2 + $0xb8] sm:$0x1] %vm336_vm1, %v1164_v32 }
 0x184   :  { %1176 = vsyncpa [#allocation3], 1 }

</bundles_post_ra>
